<compile_context>
chip_gen: v6e
topology: v6e:2x2x1
jax: 0.10.0
libtpu: 0.0.40
codegen_flags: <defaults>
</compile_context>

<pallas_src>
import functools

import jax
import jax.numpy as jnp
from jax import lax
from jax.experimental import pallas as pl
from jax.experimental.pallas import tpu as pltpu


def _bev_enhance_kernel(xb_ref, xr_ref, w1_ref, b1_ref, w2_ref, b2_ref,
                        out_ref, *, TH, W, C):
    """One grid step == one (batch, row-band) tile.

    xb_ref : ((TH+4)*W, C) f32  conv-input band (2-row halo each side: zeros at
                                the image top/bottom, real neighbour rows at
                                interior band boundaries)
    xr_ref : (TH*W, C)     f32  residual band (original input rows)
    w*_ref : (9*C, C)      bf16 conv weights, tap-major rows, BN scale folded in
    b*_ref : (1, C)        f32  folded BN shift
    out_ref: (TH*W, C)     f32
    """
    n1 = (TH + 2) * W     # conv1 output rows (flat) == conv2 input rows
    n2 = TH * W           # conv2 / module output rows (flat)

    # ---- hoisted constants (shared by both convs; JAX does not CSE these) ---
    col1 = lax.broadcasted_iota(jnp.int32, (n1, 1), 0) % W
    col2 = lax.broadcasted_iota(jnp.int32, (n2, 1), 0) % W
    mask_l1, mask_r1 = col1 != 0, col1 != (W - 1)
    mask_l2, mask_r2 = col2 != 0, col2 != (W - 1)
    zrow = jnp.zeros((1, C), jnp.bfloat16)

    def conv3x3(src, n_out, mask_l, mask_r, w_ref, shift_ref):
        """3x3 conv as ONE (n_out, 9C) x (9C, C) MXU dot (taps folded into K).

        src: bf16, (n_out + 2*W, C) flat rows with a 1-row halo on each side.
        Only 3 row-aligned bases are sliced; the +/-1-column taps are derived
        in-register (one-row shift + (n,1) wrap mask on the bf16 operand), so
        the boundary values introduced by the shift land only on masked
        (zeroed) output positions.
        Returns f32 (n_out, C) conv output + BN shift (BN scale is in w).
        """
        taps = []
        for oyb in range(3):                                      # ky = 0,1,2
            base = src[oyb * W: oyb * W + n_out]
            # kx = 0 (reads column x-1): shift rows down by one, zero col 0.
            left = jnp.where(
                mask_l,
                jnp.concatenate([zrow, base[:n_out - 1]], axis=0),
                0.0)
            # kx = 2 (reads column x+1): shift rows up by one, zero col W-1.
            right = jnp.where(
                mask_r,
                jnp.concatenate([base[1:], zrow], axis=0),
                0.0)
            taps += [left, base, right]                           # kx = 0,1,2
        cols = jnp.concatenate(taps, axis=-1)                     # (n_out, 9C)
        y = jnp.dot(cols, w_ref[...], preferred_element_type=jnp.float32)
        return y + shift_ref[...]

    # ---- conv1 (3x3, pad=1) + BN1 + ReLU on the band + 1-row halo ----------
    src1 = xb_ref[...].astype(jnp.bfloat16)            # single cast per conv
    y1 = jnp.maximum(conv3x3(src1, n1, mask_l1, mask_r1, w1_ref, b1_ref), 0.0)

    # conv2 zero-pads y1 at the image border: y1 halo rows that fall outside
    # the image (top halo of band 0 / bottom halo of the last band) must be
    # zero, not conv1-of-padded-x.
    t = pl.program_id(1)
    pos1 = lax.broadcasted_iota(jnp.int32, (n1, 1), 0)
    inside = jnp.logical_and(
        jnp.logical_or(t != 0, pos1 >= W),
        jnp.logical_or(t != pl.num_programs(1) - 1, pos1 < n1 - W))
    y1 = jnp.where(inside, y1, 0.0)

    # ---- conv2 (3x3, pad=1) + BN2 + residual + ReLU ------------------------
    src2 = y1.astype(jnp.bfloat16)                     # single cast per conv
    y2 = conv3x3(src2, n2, mask_l2, mask_r2, w2_ref, b2_ref) + xr_ref[...]
    out_ref[...] = jnp.maximum(y2, 0.0)


def _pick_band_rows(H, W):
    """Row-band height: <=32 rows, dividing H, giving >=2 bands when possible
    (pipeline / megacore work, and VMEM fit at production BEV sizes on v7x);
    fall back to the whole image."""
    for th in range(min(32, H), 0, -1):
        if H % th == 0 and H // th >= 2 and (th * W) % 8 == 0:
            return th
    return H


def _vmem_cap_bytes():
    try:
        return int(pltpu.get_tpu_info().vmem_capacity_bytes)
    except Exception:  # conservative fallback = v7x physical VMEM
        return 64 * 1024 * 1024


@jax.jit
def simple_bev_enhance(x_nchw, w1, s1, b1, w2, s2, b2):
    """x_nchw: (B, C, H, W) float32 — same convention as the PyTorch module.
    w1/w2: (3,3,C,C) HWIO conv weights; s*/b*: (C,) folded BN scale/shift."""
    B, C, H, W = x_nchw.shape
    TH = _pick_band_rows(H, W)
    n_bands = H // TH
    rin_w, n1, n2 = (TH + 4) * W, (TH + 2) * W, TH * W

    # NCHW -> NHWC.
    x = jnp.transpose(x_nchw, (0, 2, 3, 1)).astype(jnp.float32)   # (B,H,W,C)

    # Overlapped conv-input bands: 2 zero rows above/below the image, then for
    # each band its TH rows plus a 2-row halo on each side (materialized in HBM
    # so BlockSpec blocking stays static and non-overlapping).
    # TODO(synk): at production sizes replace this wrapper-side band gather
    # (extra ~4/TH HBM traffic) with in-kernel halo DMA (memory_space=pl.ANY +
    # pltpu.make_async_copy) so x is read from HBM exactly once.
    x_hal = jnp.pad(x, ((0, 0), (2, 2), (0, 0), (0, 0)))
    row_idx = jnp.arange(n_bands)[:, None] * TH + jnp.arange(TH + 4)[None, :]
    x_bands = x_hal[:, row_idx].reshape(B, n_bands, rin_w, C)
    x_res = x.reshape(B, H * W, C)

    # Conv weights: HWIO (3,3,C,C) with BN scale folded in -> tap-major
    # (9C, C) bf16 for the MXU.  Only the BN shift is applied in-kernel.
    w1f = (w1 * s1[None, None, None, :]).reshape(9 * C, C).astype(jnp.bfloat16)
    w2f = (w2 * s2[None, None, None, :]).reshape(9 * C, C).astype(jnp.bfloat16)
    b1_2d = b1.reshape(1, C).astype(jnp.float32)
    b2_2d = b2.reshape(1, C).astype(jnp.float32)

    # VMEM budget: blocks counted once WITH their double buffers (no extra x2)
    # plus in-kernel im2col / intermediate slabs; clamp to 90% of this
    # generation's physical VMEM (64 MiB on v7x, 128 MiB on v5e/v6e).
    block_bytes = (2 * rin_w * C * 4          # conv-input band (x2 buffers)
                   + 2 * n2 * C * 4           # residual band
                   + 2 * n2 * C * 4           # output band
                   + 2 * 2 * 9 * C * C * 2    # both weight matrices
                   + 2 * 2 * C * 4)           # BN shifts
    body_bytes = (rin_w * C * 2               # bf16 band
                  + n1 * 9 * C * 2            # conv1 im2col slab
                  + 2 * n1 * C * 4            # y1 + temp
                  + n2 * 9 * C * 2            # conv2 im2col slab
                  + 2 * n2 * C * 4)           # y2 / pre-store temp
    vmem_limit = int(min(0.9 * _vmem_cap_bytes(),
                         max(32 * 1024 * 1024,
                             1.5 * (block_bytes + body_bytes))))

    kernel = functools.partial(_bev_enhance_kernel, TH=TH, W=W, C=C)

    # TODO(synk): weight/shift blocks have a constant index and could use
    # pipeline_mode=pl.Buffered(1) to drop their second VMEM buffer.
    out_flat = pl.pallas_call(
        kernel,
        out_shape=jax.ShapeDtypeStruct((B, H * W, C), jnp.float32),
        grid_spec=pltpu.PrefetchScalarGridSpec(
            num_scalar_prefetch=0,
            grid=(B, n_bands),
            in_specs=[
                pl.BlockSpec((None, None, rin_w, C), lambda b, t: (b, t, 0, 0)),
                pl.BlockSpec((None, n2, C), lambda b, t: (b, t, 0)),
                pl.BlockSpec((9 * C, C), lambda b, t: (0, 0)),
                pl.BlockSpec((1, C), lambda b, t: (0, 0)),
                pl.BlockSpec((9 * C, C), lambda b, t: (0, 0)),
                pl.BlockSpec((1, C), lambda b, t: (0, 0)),
            ],
            out_specs=pl.BlockSpec((None, n2, C), lambda b, t: (b, t, 0)),
        ),
        compiler_params=pltpu.CompilerParams(
            dimension_semantics=("parallel", "parallel"),
            vmem_limit_bytes=vmem_limit),
    )(x_bands, x_res, w1f, b1_2d, w2f, b2_2d)

    out = out_flat.reshape(B, H, W, C)
    return jnp.transpose(out, (0, 3, 1, 2))


def _reference_forward(x_nchw, w1, s1, b1, w2, s2, b2):
    """Pure-JAX reference (f32 convs, unfolded BN scale) for correctness."""
    x = jnp.transpose(x_nchw, (0, 2, 3, 1))
    dn = ("NHWC", "HWIO", "NHWC")
    y = lax.conv_general_dilated(x, w1, (1, 1), [(1, 1), (1, 1)],
                                 dimension_numbers=dn)
    y = jnp.maximum(y * s1 + b1, 0.0)
    y = lax.conv_general_dilated(y, w2, (1, 1), [(1, 1), (1, 1)],
                                 dimension_numbers=dn)
    y = y * s2 + b2
    out = jnp.maximum(y + x, 0.0)
    return jnp.transpose(out, (0, 3, 1, 2))


def _make_params(key, C, eps=1e-5):
    """Synthetic parameters matching the PyTorch module: conv weight as HWIO
    (3,3,Cin,Cout); BN gamma/beta/mean/var folded to inference scale/shift."""
    ks = jax.random.split(key, 10)

    def conv_w(k):
        return 0.05 * jax.random.normal(k, (3, 3, C, C), jnp.float32)

    def bn(kg, kb, km, kv):
        gamma = 1.0 + 0.1 * jax.random.normal(kg, (C,), jnp.float32)
        beta = 0.1 * jax.random.normal(kb, (C,), jnp.float32)
        mean = 0.1 * jax.random.normal(km, (C,), jnp.float32)
        var = 0.5 + jnp.abs(jax.random.normal(kv, (C,), jnp.float32))
        scale = gamma / jnp.sqrt(var + eps)
        shift = beta - mean * scale
        return scale, shift

    w1 = conv_w(ks[0])
    s1, b1 = bn(ks[1], ks[2], ks[3], ks[4])
    w2 = conv_w(ks[5])
    s2, b2 = bn(ks[6], ks[7], ks[8], ks[9])
    return w1, s1, b1, w2, s2, b2


if __name__ == "__main__":
    B, C, H, W = 2, 32, 16, 16   # small BEV feature map (production uses C=128)

    key = jax.random.PRNGKey(0)
    kx, kp = jax.random.split(key)
    x = jax.random.normal(kx, (B, C, H, W), jnp.float32)
    w1, s1, b1, w2, s2, b2 = _make_params(kp, C)

    out = simple_bev_enhance(x, w1, s1, b1, w2, s2, b2)
    out = jax.block_until_ready(out)

    ref = _reference_forward(x, w1, s1, b1, w2, s2, b2)
    assert out.shape == (B, C, H, W)
    # bf16 MXU operands (and BN scale folded into bf16 weights) vs f32
    # reference -> loosened tolerance, unchanged from the reviewed version.
    assert jnp.allclose(out, ref, atol=5e-2, rtol=5e-2), (
        float(jnp.max(jnp.abs(out - ref))))

    print("KERNEL_OK")
</pallas_src>

<mosaic_0001>
module attributes {stable_mosaic.version = 11 : i64} {
  func.func @_bev_enhance_kernel(%arg0: i32, %arg1: i32, %arg2: memref<1x1x192x32xf32, #tpu.memory_space<vmem>>, %arg3: memref<1x128x32xf32, #tpu.memory_space<vmem>>, %arg4: memref<288x32xbf16, #tpu.memory_space<vmem>>, %arg5: memref<1x32xf32, #tpu.memory_space<vmem>>, %arg6: memref<288x32xbf16, #tpu.memory_space<vmem>>, %arg7: memref<1x32xf32, #tpu.memory_space<vmem>>, %arg8: memref<1x128x32xf32, #tpu.memory_space<vmem>>) attributes {dimension_semantics = [#tpu.dimension_semantics<parallel>, #tpu.dimension_semantics<parallel>], iteration_bounds = array<i64: 2, 2>, scalar_prefetch = 0 : i64, scratch_operands = 0 : i64, tpu.core_type = #tpu.core_type<tc>, window_params = [{transform_indices = @transform_0, window_bounds = array<i64: 1, 1, 192, 32>}, {transform_indices = @transform_1, window_bounds = array<i64: 1, 128, 32>}, {pipeline_mode = #tpu.pipeline_mode<synchronous>, transform_indices = @transform_2, window_bounds = array<i64: 288, 32>}, {pipeline_mode = #tpu.pipeline_mode<synchronous>, transform_indices = @transform_3, window_bounds = array<i64: 1, 32>}, {pipeline_mode = #tpu.pipeline_mode<synchronous>, transform_indices = @transform_4, window_bounds = array<i64: 288, 32>}, {pipeline_mode = #tpu.pipeline_mode<synchronous>, transform_indices = @transform_5, window_bounds = array<i64: 1, 32>}, {transform_indices = @transform_6, window_bounds = array<i64: 1, 128, 32>}]} {
    %0 = tpu.iota {dimensions = array<i32: 0>} : vector<160x1xi32>
    %c16_i32 = arith.constant 16 : i32
    %c0_i32 = arith.constant 0 : i32
    %1 = arith.cmpi eq, %c16_i32, %c0_i32 : i32
    %c1_i32 = arith.constant 1 : i32
    %2 = arith.select %1, %c1_i32, %c16_i32 : i32
    %3 = vector.broadcast %2 : i32 to vector<160x1xi32>
    %4 = arith.remsi %0, %3 : vector<160x1xi32>
    %c0_i32_0 = arith.constant 0 : i32
    %5 = vector.broadcast %c0_i32_0 : i32 to vector<160x1xi32>
    %6 = arith.cmpi ne, %4, %5 : vector<160x1xi32>
    %c0_i32_1 = arith.constant 0 : i32
    %7 = vector.broadcast %c0_i32_1 : i32 to vector<160x1xi32>
    %8 = arith.cmpi slt, %4, %7 : vector<160x1xi32>
    %c0_i32_2 = arith.constant 0 : i32
    %9 = arith.cmpi slt, %2, %c0_i32_2 : i32
    %10 = vector.broadcast %9 : i1 to vector<160x1xi1>
    %11 = vector.broadcast %10 : vector<160x1xi1> to vector<160x1xi1>
    %12 = arith.xori %8, %11 : vector<160x1xi1>
    %13 = arith.andi %12, %6 : vector<160x1xi1>
    %14 = vector.broadcast %2 : i32 to vector<160x1xi32>
    %15 = arith.addi %4, %14 : vector<160x1xi32>
    %16 = arith.select %13, %15, %4 : vector<160x1xi1>, vector<160x1xi32>
    %17 = tpu.iota {dimensions = array<i32: 0>} : vector<128x1xi32>
    %c16_i32_3 = arith.constant 16 : i32
    %c0_i32_4 = arith.constant 0 : i32
    %18 = arith.cmpi eq, %c16_i32_3, %c0_i32_4 : i32
    %c1_i32_5 = arith.constant 1 : i32
    %19 = arith.select %18, %c1_i32_5, %c16_i32_3 : i32
    %20 = vector.broadcast %19 : i32 to vector<128x1xi32>
    %21 = arith.remsi %17, %20 : vector<128x1xi32>
    %c0_i32_6 = arith.constant 0 : i32
    %22 = vector.broadcast %c0_i32_6 : i32 to vector<128x1xi32>
    %23 = arith.cmpi ne, %21, %22 : vector<128x1xi32>
    %c0_i32_7 = arith.constant 0 : i32
    %24 = vector.broadcast %c0_i32_7 : i32 to vector<128x1xi32>
    %25 = arith.cmpi slt, %21, %24 : vector<128x1xi32>
    %c0_i32_8 = arith.constant 0 : i32
    %26 = arith.cmpi slt, %19, %c0_i32_8 : i32
    %27 = vector.broadcast %26 : i1 to vector<128x1xi1>
    %28 = vector.broadcast %27 : vector<128x1xi1> to vector<128x1xi1>
    %29 = arith.xori %25, %28 : vector<128x1xi1>
    %30 = arith.andi %29, %23 : vector<128x1xi1>
    %31 = vector.broadcast %19 : i32 to vector<128x1xi32>
    %32 = arith.addi %21, %31 : vector<128x1xi32>
    %33 = arith.select %30, %32, %21 : vector<128x1xi1>, vector<128x1xi32>
    %c0_i32_9 = arith.constant 0 : i32
    %34 = vector.broadcast %c0_i32_9 : i32 to vector<160x1xi32>
    %35 = arith.cmpi ne, %16, %34 : vector<160x1xi32>
    %c15_i32 = arith.constant 15 : i32
    %36 = vector.broadcast %c15_i32 : i32 to vector<160x1xi32>
    %37 = arith.cmpi ne, %16, %36 : vector<160x1xi32>
    %c0_i32_10 = arith.constant 0 : i32
    %38 = vector.broadcast %c0_i32_10 : i32 to vector<128x1xi32>
    %39 = arith.cmpi ne, %33, %38 : vector<128x1xi32>
    %c15_i32_11 = arith.constant 15 : i32
    %40 = vector.broadcast %c15_i32_11 : i32 to vector<128x1xi32>
    %41 = arith.cmpi ne, %33, %40 : vector<128x1xi32>
    %cst = arith.constant 0.000000e+00 : bf16
    %42 = vector.broadcast %cst : bf16 to vector<1x32xbf16>
    %c0 = arith.constant 0 : index
    %c0_12 = arith.constant 0 : index
    %c0_13 = arith.constant 0 : index
    %c0_14 = arith.constant 0 : index
    %43 = vector.load %arg2[%c0, %c0_12, %c0_13, %c0_14] : memref<1x1x192x32xf32, #tpu.memory_space<vmem>>, vector<1x1x192x32xf32>
    %44 = vector.shape_cast %43 : vector<1x1x192x32xf32> to vector<192x32xf32>
    %45 = arith.truncf %44 : vector<192x32xf32> to vector<192x32xbf16>
    %46 = vector.extract_strided_slice %45 {offsets = [0, 0], sizes = [160, 32], strides = [1, 1]} : vector<192x32xbf16> to vector<160x32xbf16>
    %47 = vector.extract_strided_slice %46 {offsets = [0, 0], sizes = [159, 32], strides = [1, 1]} : vector<160x32xbf16> to vector<159x32xbf16>
    %48 = tpu.concatenate %42, %47 in 0 : vector<1x32xbf16>, vector<159x32xbf16> -> vector<160x32xbf16>
    %cst_15 = arith.constant 0.000000e+00 : f32
    %49 = arith.truncf %cst_15 : f32 to bf16
    %50 = vector.shape_cast %35 : vector<160x1xi1> to vector<160x1xi1>
    %51 = vector.broadcast %50 : vector<160x1xi1> to vector<160x32xi1>
    %52 = vector.broadcast %49 : bf16 to vector<160x32xbf16>
    %53 = arith.select %51, %48, %52 : vector<160x32xi1>, vector<160x32xbf16>
    %54 = vector.extract_strided_slice %46 {offsets = [1, 0], sizes = [159, 32], strides = [1, 1]} : vector<160x32xbf16> to vector<159x32xbf16>
    %55 = tpu.concatenate %54, %42 in 0 : vector<159x32xbf16>, vector<1x32xbf16> -> vector<160x32xbf16>
    %cst_16 = arith.constant 0.000000e+00 : f32
    %56 = arith.truncf %cst_16 : f32 to bf16
    %57 = vector.shape_cast %37 : vector<160x1xi1> to vector<160x1xi1>
    %58 = vector.broadcast %57 : vector<160x1xi1> to vector<160x32xi1>
    %59 = vector.broadcast %56 : bf16 to vector<160x32xbf16>
    %60 = arith.select %58, %55, %59 : vector<160x32xi1>, vector<160x32xbf16>
    %61 = vector.extract_strided_slice %45 {offsets = [16, 0], sizes = [160, 32], strides = [1, 1]} : vector<192x32xbf16> to vector<160x32xbf16>
    %62 = vector.extract_strided_slice %61 {offsets = [0, 0], sizes = [159, 32], strides = [1, 1]} : vector<160x32xbf16> to vector<159x32xbf16>
    %63 = tpu.concatenate %42, %62 in 0 : vector<1x32xbf16>, vector<159x32xbf16> -> vector<160x32xbf16>
    %cst_17 = arith.constant 0.000000e+00 : f32
    %64 = arith.truncf %cst_17 : f32 to bf16
    %65 = vector.shape_cast %35 : vector<160x1xi1> to vector<160x1xi1>
    %66 = vector.broadcast %65 : vector<160x1xi1> to vector<160x32xi1>
    %67 = vector.broadcast %64 : bf16 to vector<160x32xbf16>
    %68 = arith.select %66, %63, %67 : vector<160x32xi1>, vector<160x32xbf16>
    %69 = vector.extract_strided_slice %61 {offsets = [1, 0], sizes = [159, 32], strides = [1, 1]} : vector<160x32xbf16> to vector<159x32xbf16>
    %70 = tpu.concatenate %69, %42 in 0 : vector<159x32xbf16>, vector<1x32xbf16> -> vector<160x32xbf16>
    %cst_18 = arith.constant 0.000000e+00 : f32
    %71 = arith.truncf %cst_18 : f32 to bf16
    %72 = vector.shape_cast %37 : vector<160x1xi1> to vector<160x1xi1>
    %73 = vector.broadcast %72 : vector<160x1xi1> to vector<160x32xi1>
    %74 = vector.broadcast %71 : bf16 to vector<160x32xbf16>
    %75 = arith.select %73, %70, %74 : vector<160x32xi1>, vector<160x32xbf16>
    %76 = vector.extract_strided_slice %45 {offsets = [32, 0], sizes = [160, 32], strides = [1, 1]} : vector<192x32xbf16> to vector<160x32xbf16>
    %77 = vector.extract_strided_slice %76 {offsets = [0, 0], sizes = [159, 32], strides = [1, 1]} : vector<160x32xbf16> to vector<159x32xbf16>
    %78 = tpu.concatenate %42, %77 in 0 : vector<1x32xbf16>, vector<159x32xbf16> -> vector<160x32xbf16>
    %cst_19 = arith.constant 0.000000e+00 : f32
    %79 = arith.truncf %cst_19 : f32 to bf16
    %80 = vector.shape_cast %35 : vector<160x1xi1> to vector<160x1xi1>
    %81 = vector.broadcast %80 : vector<160x1xi1> to vector<160x32xi1>
    %82 = vector.broadcast %79 : bf16 to vector<160x32xbf16>
    %83 = arith.select %81, %78, %82 : vector<160x32xi1>, vector<160x32xbf16>
    %84 = vector.extract_strided_slice %76 {offsets = [1, 0], sizes = [159, 32], strides = [1, 1]} : vector<160x32xbf16> to vector<159x32xbf16>
    %85 = tpu.concatenate %84, %42 in 0 : vector<159x32xbf16>, vector<1x32xbf16> -> vector<160x32xbf16>
    %cst_20 = arith.constant 0.000000e+00 : f32
    %86 = arith.truncf %cst_20 : f32 to bf16
    %87 = vector.shape_cast %37 : vector<160x1xi1> to vector<160x1xi1>
    %88 = vector.broadcast %87 : vector<160x1xi1> to vector<160x32xi1>
    %89 = vector.broadcast %86 : bf16 to vector<160x32xbf16>
    %90 = arith.select %88, %85, %89 : vector<160x32xi1>, vector<160x32xbf16>
    %91 = tpu.concatenate %53, %46, %60, %68, %61, %75, %83, %76, %90 in 1 : vector<160x32xbf16>, vector<160x32xbf16>, vector<160x32xbf16>, vector<160x32xbf16>, vector<160x32xbf16>, vector<160x32xbf16>, vector<160x32xbf16>, vector<160x32xbf16>, vector<160x32xbf16> -> vector<160x288xbf16>
    %c0_21 = arith.constant 0 : index
    %c0_22 = arith.constant 0 : index
    %92 = vector.load %arg4[%c0_21, %c0_22] : memref<288x32xbf16, #tpu.memory_space<vmem>>, vector<288x32xbf16>
    %cst_23 = arith.constant dense<0.000000e+00> : vector<160x32xf32>
    %93 = tpu.matmul %91, %92, %cst_23 {dimension_numbers = #tpu.dot_dimension_numbers<[1], [0], [0], [1], [0, 0, 1, 1], [], []>} : vector<160x288xbf16>, vector<288x32xbf16>, vector<160x32xf32> -> vector<160x32xf32>
    %c0_24 = arith.constant 0 : index
    %c0_25 = arith.constant 0 : index
    %94 = vector.load %arg5[%c0_24, %c0_25] : memref<1x32xf32, #tpu.memory_space<vmem>>, vector<1x32xf32>
    %95 = vector.broadcast %94 : vector<1x32xf32> to vector<160x32xf32>
    %96 = arith.addf %93, %95 : vector<160x32xf32>
    %cst_26 = arith.constant 0.000000e+00 : f32
    %97 = vector.broadcast %cst_26 : f32 to vector<160x32xf32>
    %98 = arith.maximumf %96, %97 : vector<160x32xf32>
    %99 = tpu.iota {dimensions = array<i32: 0>} : vector<160x1xi32>
    %c0_i32_27 = arith.constant 0 : i32
    %100 = arith.cmpi ne, %arg1, %c0_i32_27 : i32
    %c16_i32_28 = arith.constant 16 : i32
    %101 = vector.broadcast %c16_i32_28 : i32 to vector<160x1xi32>
    %102 = arith.cmpi sge, %99, %101 : vector<160x1xi32>
    %103 = vector.broadcast %100 : i1 to vector<160x1xi1>
    %104 = arith.ori %103, %102 : vector<160x1xi1>
    %c1_i32_29 = arith.constant 1 : i32
    %105 = arith.cmpi ne, %arg1, %c1_i32_29 : i32
    %c144_i32 = arith.constant 144 : i32
    %106 = vector.broadcast %c144_i32 : i32 to vector<160x1xi32>
    %107 = arith.cmpi slt, %99, %106 : vector<160x1xi32>
    %108 = vector.broadcast %105 : i1 to vector<160x1xi1>
    %109 = arith.ori %108, %107 : vector<160x1xi1>
    %110 = arith.andi %104, %109 : vector<160x1xi1>
    %cst_30 = arith.constant 0.000000e+00 : f32
    %111 = vector.shape_cast %110 : vector<160x1xi1> to vector<160x1xi1>
    %112 = vector.broadcast %111 : vector<160x1xi1> to vector<160x32xi1>
    %113 = vector.broadcast %cst_30 : f32 to vector<160x32xf32>
    %114 = arith.select %112, %98, %113 : vector<160x32xi1>, vector<160x32xf32>
    %115 = arith.truncf %114 : vector<160x32xf32> to vector<160x32xbf16>
    %116 = vector.extract_strided_slice %115 {offsets = [0, 0], sizes = [128, 32], strides = [1, 1]} : vector<160x32xbf16> to vector<128x32xbf16>
    %117 = vector.extract_strided_slice %116 {offsets = [0, 0], sizes = [127, 32], strides = [1, 1]} : vector<128x32xbf16> to vector<127x32xbf16>
    %118 = tpu.concatenate %42, %117 in 0 : vector<1x32xbf16>, vector<127x32xbf16> -> vector<128x32xbf16>
    %cst_31 = arith.constant 0.000000e+00 : f32
    %119 = arith.truncf %cst_31 : f32 to bf16
    %120 = vector.shape_cast %39 : vector<128x1xi1> to vector<128x1xi1>
    %121 = vector.broadcast %120 : vector<128x1xi1> to vector<128x32xi1>
    %122 = vector.broadcast %119 : bf16 to vector<128x32xbf16>
    %123 = arith.select %121, %118, %122 : vector<128x32xi1>, vector<128x32xbf16>
    %124 = vector.extract_strided_slice %116 {offsets = [1, 0], sizes = [127, 32], strides = [1, 1]} : vector<128x32xbf16> to vector<127x32xbf16>
    %125 = tpu.concatenate %124, %42 in 0 : vector<127x32xbf16>, vector<1x32xbf16> -> vector<128x32xbf16>
    %cst_32 = arith.constant 0.000000e+00 : f32
    %126 = arith.truncf %cst_32 : f32 to bf16
    %127 = vector.shape_cast %41 : vector<128x1xi1> to vector<128x1xi1>
    %128 = vector.broadcast %127 : vector<128x1xi1> to vector<128x32xi1>
    %129 = vector.broadcast %126 : bf16 to vector<128x32xbf16>
    %130 = arith.select %128, %125, %129 : vector<128x32xi1>, vector<128x32xbf16>
    %131 = vector.extract_strided_slice %115 {offsets = [16, 0], sizes = [128, 32], strides = [1, 1]} : vector<160x32xbf16> to vector<128x32xbf16>
    %132 = vector.extract_strided_slice %131 {offsets = [0, 0], sizes = [127, 32], strides = [1, 1]} : vector<128x32xbf16> to vector<127x32xbf16>
    %133 = tpu.concatenate %42, %132 in 0 : vector<1x32xbf16>, vector<127x32xbf16> -> vector<128x32xbf16>
    %cst_33 = arith.constant 0.000000e+00 : f32
    %134 = arith.truncf %cst_33 : f32 to bf16
    %135 = vector.shape_cast %39 : vector<128x1xi1> to vector<128x1xi1>
    %136 = vector.broadcast %135 : vector<128x1xi1> to vector<128x32xi1>
    %137 = vector.broadcast %134 : bf16 to vector<128x32xbf16>
    %138 = arith.select %136, %133, %137 : vector<128x32xi1>, vector<128x32xbf16>
    %139 = vector.extract_strided_slice %131 {offsets = [1, 0], sizes = [127, 32], strides = [1, 1]} : vector<128x32xbf16> to vector<127x32xbf16>
    %140 = tpu.concatenate %139, %42 in 0 : vector<127x32xbf16>, vector<1x32xbf16> -> vector<128x32xbf16>
    %cst_34 = arith.constant 0.000000e+00 : f32
    %141 = arith.truncf %cst_34 : f32 to bf16
    %142 = vector.shape_cast %41 : vector<128x1xi1> to vector<128x1xi1>
    %143 = vector.broadcast %142 : vector<128x1xi1> to vector<128x32xi1>
    %144 = vector.broadcast %141 : bf16 to vector<128x32xbf16>
    %145 = arith.select %143, %140, %144 : vector<128x32xi1>, vector<128x32xbf16>
    %146 = vector.extract_strided_slice %115 {offsets = [32, 0], sizes = [128, 32], strides = [1, 1]} : vector<160x32xbf16> to vector<128x32xbf16>
    %147 = vector.extract_strided_slice %146 {offsets = [0, 0], sizes = [127, 32], strides = [1, 1]} : vector<128x32xbf16> to vector<127x32xbf16>
    %148 = tpu.concatenate %42, %147 in 0 : vector<1x32xbf16>, vector<127x32xbf16> -> vector<128x32xbf16>
    %cst_35 = arith.constant 0.000000e+00 : f32
    %149 = arith.truncf %cst_35 : f32 to bf16
    %150 = vector.shape_cast %39 : vector<128x1xi1> to vector<128x1xi1>
    %151 = vector.broadcast %150 : vector<128x1xi1> to vector<128x32xi1>
    %152 = vector.broadcast %149 : bf16 to vector<128x32xbf16>
    %153 = arith.select %151, %148, %152 : vector<128x32xi1>, vector<128x32xbf16>
    %154 = vector.extract_strided_slice %146 {offsets = [1, 0], sizes = [127, 32], strides = [1, 1]} : vector<128x32xbf16> to vector<127x32xbf16>
    %155 = tpu.concatenate %154, %42 in 0 : vector<127x32xbf16>, vector<1x32xbf16> -> vector<128x32xbf16>
    %cst_36 = arith.constant 0.000000e+00 : f32
    %156 = arith.truncf %cst_36 : f32 to bf16
    %157 = vector.shape_cast %41 : vector<128x1xi1> to vector<128x1xi1>
    %158 = vector.broadcast %157 : vector<128x1xi1> to vector<128x32xi1>
    %159 = vector.broadcast %156 : bf16 to vector<128x32xbf16>
    %160 = arith.select %158, %155, %159 : vector<128x32xi1>, vector<128x32xbf16>
    %161 = tpu.concatenate %123, %116, %130, %138, %131, %145, %153, %146, %160 in 1 : vector<128x32xbf16>, vector<128x32xbf16>, vector<128x32xbf16>, vector<128x32xbf16>, vector<128x32xbf16>, vector<128x32xbf16>, vector<128x32xbf16>, vector<128x32xbf16>, vector<128x32xbf16> -> vector<128x288xbf16>
    %c0_37 = arith.constant 0 : index
    %c0_38 = arith.constant 0 : index
    %162 = vector.load %arg6[%c0_37, %c0_38] : memref<288x32xbf16, #tpu.memory_space<vmem>>, vector<288x32xbf16>
    %cst_39 = arith.constant dense<0.000000e+00> : vector<128x32xf32>
    %163 = tpu.matmul %161, %162, %cst_39 {dimension_numbers = #tpu.dot_dimension_numbers<[1], [0], [0], [1], [0, 0, 1, 1], [], []>} : vector<128x288xbf16>, vector<288x32xbf16>, vector<128x32xf32> -> vector<128x32xf32>
    %c0_40 = arith.constant 0 : index
    %c0_41 = arith.constant 0 : index
    %164 = vector.load %arg7[%c0_40, %c0_41] : memref<1x32xf32, #tpu.memory_space<vmem>>, vector<1x32xf32>
    %165 = vector.broadcast %164 : vector<1x32xf32> to vector<128x32xf32>
    %166 = arith.addf %163, %165 : vector<128x32xf32>
    %c0_42 = arith.constant 0 : index
    %c0_43 = arith.constant 0 : index
    %c0_44 = arith.constant 0 : index
    %167 = vector.load %arg3[%c0_42, %c0_43, %c0_44] : memref<1x128x32xf32, #tpu.memory_space<vmem>>, vector<1x128x32xf32>
    %168 = vector.shape_cast %167 : vector<1x128x32xf32> to vector<128x32xf32>
    %169 = arith.addf %166, %168 : vector<128x32xf32>
    %cst_45 = arith.constant 0.000000e+00 : f32
    %170 = vector.broadcast %cst_45 : f32 to vector<128x32xf32>
    %171 = arith.maximumf %169, %170 : vector<128x32xf32>
    %c0_46 = arith.constant 0 : index
    %c0_47 = arith.constant 0 : index
    %c0_48 = arith.constant 0 : index
    %172 = vector.load %arg8[%c0_46, %c0_47, %c0_48] : memref<1x128x32xf32, #tpu.memory_space<vmem>>, vector<1x128x32xf32>
    %173 = vector.shape_cast %172 : vector<1x128x32xf32> to vector<128x32xf32>
    %174 = vector.shape_cast %171 : vector<128x32xf32> to vector<1x128x32xf32>
    tpu.vector_store %arg8[%c0_46, %c0_47, %c0_48], %174 {strides = array<i32>} : memref<1x128x32xf32, #tpu.memory_space<vmem>>, vector<1x128x32xf32>,
    return
  }
  func.func @transform_0(%arg0: i32, %arg1: i32) -> (i32, i32, i32, i32) {
    %c0_i32 = arith.constant 0 : i32
    %c0_i32_0 = arith.constant 0 : i32
    %c0_i32_1 = arith.constant 0 : i32
    return %arg0, %arg1, %c0_i32, %c0_i32_0 : i32, i32, i32, i32
  }
  func.func @transform_1(%arg0: i32, %arg1: i32) -> (i32, i32, i32) {
    %c0_i32 = arith.constant 0 : i32
    %c0_i32_0 = arith.constant 0 : i32
    return %arg0, %arg1, %c0_i32 : i32, i32, i32
  }
  func.func @transform_2(%arg0: i32, %arg1: i32) -> (i32, i32) {
    %c0_i32 = arith.constant 0 : i32
    %c0_i32_0 = arith.constant 0 : i32
    %c0_i32_1 = arith.constant 0 : i32
    return %c0_i32, %c0_i32_0 : i32, i32
  }
  func.func @transform_3(%arg0: i32, %arg1: i32) -> (i32, i32) {
    %c0_i32 = arith.constant 0 : i32
    %c0_i32_0 = arith.constant 0 : i32
    %c0_i32_1 = arith.constant 0 : i32
    return %c0_i32, %c0_i32_0 : i32, i32
  }
  func.func @transform_4(%arg0: i32, %arg1: i32) -> (i32, i32) {
    %c0_i32 = arith.constant 0 : i32
    %c0_i32_0 = arith.constant 0 : i32
    %c0_i32_1 = arith.constant 0 : i32
    return %c0_i32, %c0_i32_0 : i32, i32
  }
  func.func @transform_5(%arg0: i32, %arg1: i32) -> (i32, i32) {
    %c0_i32 = arith.constant 0 : i32
    %c0_i32_0 = arith.constant 0 : i32
    %c0_i32_1 = arith.constant 0 : i32
    return %c0_i32, %c0_i32_0 : i32, i32
  }
  func.func @transform_6(%arg0: i32, %arg1: i32) -> (i32, i32, i32) {
    %c0_i32 = arith.constant 0 : i32
    %c0_i32_0 = arith.constant 0 : i32
    return %arg0, %arg1, %c0_i32 : i32, i32, i32
  }
}

</mosaic_0001>

<bundles_post_ra>
// kernel: simple_bev_enhance.1
= control target key start
LH: loop header
LB: loop body
LE: loop exit
PB: predicated region body
PF: predicated region fallthrough
CT: control target
= control target key end

     0   :  { %11 = vsyncpa [#allocation3], 0  ;;  %s5168_s0 = inlined_call_operand.vmem [shape: f32[2,2,192,32], index: 0, kind: input, shape index: {}]   ;;  %s5169_s1 = inlined_call_operand.vmem [shape: f32[2,256,32], index: 1, kind: input, shape index: {}]   ;;  %s5170_s2 = inlined_call_operand.vmem [shape: bf16[288,32], index: 2, kind: input, shape index: {}]   ;;  %s5171_s3 = inlined_call_operand.vmem [shape: f32[1,32], index: 3, kind: input, shape index: {}]   ;;  %s5172_s4 = inlined_call_operand.vmem [shape: bf16[288,32], index: 4, kind: input, shape index: {}]   ;;  %s5173_s5 = inlined_call_operand.vmem [shape: f32[1,32], index: 5, kind: input, shape index: {}]   ;;  %s5174_s6 = inlined_call_operand.hbm [shape: f32[2,256,32], index: 6, kind: output, shape index: {}]  }
   0x1   :  { %13 = vsyncpa [#allocation3 + $0x1], 0  ;;  %s3606_s21 = smov 0   ;;  %s3608_s22 = smov 0  }
   0x2   :  { %s3610_s23 = smov 0   ;;  %s3612_s24 = smov 0  }
   0x3   :  { %s3614_s25 = smov 0   ;;  %s3616_s26 = smov 0  }
   0x4   :  { %s3618_s27 = smov 0   ;;  %s3620_s28 = smov 0  }
   0x5 LB: > { %s3051_s29 = sadd.s32 4294967295, %s3561_s28   ;;  %s3052_s30 = sadd.s32 4294967294, %s3561_s28   ;;  %s3561_s28 = sphi %s3620_s28, %s19_s28   ;;  %s3557_s27 = sphi %s3618_s27, %s5421_s27   ;;  %s3553_s26 = sphi %s3616_s26, %s5420_s26   ;;  %s3549_s25 = sphi %s3614_s25, %s5419_s25   ;;  %s3545_s24 = sphi %s3612_s24, %s5418_s24   ;;  %s3541_s23 = sphi %s3610_s23, %s5417_s23   ;;  %s3537_s22 = sphi %s3608_s22, %s5416_s22   ;;  %s3533_s21 = sphi %s3606_s21, %s5415_s21  }
   0x6   : > { %s28_s7 = sadd.s32 1, %s3553_s26  ;;  %s31_s8 = sadd.s32 1, %s3557_s27 }
   0x7   : > { %p29_p0 = scmp.ge.s32.totalorder %s28_s7, 2  ;;  %p190_p1 = scmp.ne.s32.totalorder %s3541_s23, %s3537_s22 }
   0x8   : > { %p191_p2 = scmp.eq.s32.totalorder %s3051_s29, 3  ;;  %p196_p5 = scmp.ne.s32.totalorder %s3537_s22, %s3533_s21 }
   0x9   : > { %s5423_s7 = smov (%p29_p0, %s28_s7), 0  ;;  %s5425_s8 = smov (!%p29_p0, %s31_s8), %s3557_s27 }
   0xa   : > { %s176_s9 = ssub.s32 %s3553_s26, %s5423_s7  ;;  %p3657_p3 = por %p191_p2, %p190_p1 }
   0xb   : > { %p33_p4 = scmp.ge.s32.totalorder %s5425_s8, 2  ;;  %p197_p6 = scmp.eq.s32.totalorder %s3052_s30, 3 }
   0xc   : > { %p3055_p7 = scmp.ge.s32.totalorder %s3561_s28, 1  ;;  %p252_p9 = scmp.lt.s32.totalorder %s3561_s28, 5 }
   0xd   : > { %s5427_s8 = smov (%p33_p4, %s5425_s8), 0  ;;  %p3666_p8 = por %p197_p6, %p196_p5 }
   0xe   : > { %s175_s12 = ssub.s32 %s3557_s27, %s5427_s8  ;;  %s180_s13 = sadd.s32 1, %s3541_s23 }
   0xf   : > { %s177_s14 = sor.u32 %s176_s9, %s175_s12  ;;  %p253_p10 = pnand %p3055_p7, %p252_p9 }
  0x10   : > { %p178_p11 = scmp.eq.s32.totalorder %s177_s14, 0  ;;  %p295_p12 = scmp.lt.s32.totalorder (!%p253_p10), %s3549_s25, 1 }
  0x11   : > { %256 = sbr.rel (%p253_p10) target bundleno = 845 (0x34d), region = 44  ;;  %p297_p13 = scmp.lt.s32.totalorder (!%p253_p10), %s3545_s24, 1 }
  0x12   : > { %s3675_s15 = scalar_select %p178_p11, %s3541_s23, %s180_s13  }
  0x13   : > { %s3565_s9 = smov (!%p253_p10), 32   ;;  %p1877_p0 = scmp.ne.s32.totalorder (!%p253_p10), %s3545_s24, 0 }
  0x14   : > { %s5323_s30 = smov (!%p253_p10), 64   ;;  %s5325_s14 = smov (!%p253_p10), 96  }
  0x15   : > { %p1921_p1 = scmp.ne.s32.totalorder (!%p253_p10), %s3545_s24, 1 }
  0x16   : > { %v318_v0 = vlaneseq  ;;  %v3433_v1 = vld [vmem:[%s5170_s2 + $0x78] sm:$0xff]   ;;  %s3683_s18 = scalar_select %p295_p12, %s3549_s25, 1  ;;  %vm3563_vm1 = vmmov 1   ;;  %vm5175_vm3 = vsmask.f32 256  ;;  %vm745_vm5 = vcmask 1040384  }
  0x17   : > { %s298_s19 = scalar_select %p297_p13, %s3545_s24, 1  ;;  %3143 = vmatprep.subr.bf16.mxu0 %v3433_v1  ;;  %v3434_v7 = vld [vmem:[%s5170_s2 + $0x38] sm:$0xff]   ;;  %vm3700_vm2 = vmpackc.low %vm3563_vm1, %vm3563_vm1  ;;  %v3435_v15 = vld [vmem:[%s5170_s2 + $0x70] sm:$0xff]   ;;  %v3564_v16 = vmov 0   ;;  %vm5177_vm9 = vsmask.f32 7424 }
  0x18   : > { %v3685_v2 = vshrl.u32 %v318_v0, 7  ;;  %s3354_s20 = smul.u32 48, %s3683_s18  ;;  %3144 = vmatpush3.bf16.msra.mxu0 %v3434_v7  ;;  %v3723_v18 = vsel %vm3700_vm2, 65537, %v3564_v16  ;;  %v3436_v20 = vld [vmem:[%s5170_s2 + $0x30] sm:$0xff]   ;;  %vm3779_vm12 = vmand %vm745_vm5, %vm5175_vm3  ;;  %v5228_v61 = vmov 0  ;;  %v3437_v9 = vld [vmem:[%s5170_s2 + $0x68] sm:$0xff]  }
  0x19   : > { %s3353_s29 = smul.u32 24, %s298_s19  ;;  %3145 = vmatprep.subr.bf16.mxu0 %v3435_v15  ;;  %s5204_s19 = smov 64  }
  0x1a   : > { %v343_v3 = vand.u32 15, %v3685_v2  ;;  %v320_v4 = vadd.s32 8, %v3685_v2  ;;  %v322_v5 = vadd.s32 24, %v3685_v2  ;;  %v321_v6 = vadd.s32 16, %v3685_v2  ;;  %s1942_s16 = scalar_select %p1921_p1, 1, 0 }
  0x1b   : > { %s301_s12 = sadd.s32 %s3354_s20, %s3353_s29  ;;  %v324_v12 = vadd.s32 40, %v3685_v2  ;;  %v3709_v13 = vadd.s32 32, %v3685_v2  ;;  %v3743_v31 = vadd.s32 56, %v3685_v2  ;;  %s3059_s17 = sshll.u32 %s3683_s18, 5 }
  0x1c   : > { %vm3696_vm0 = vcmp.ne.s32.totalorder %v343_v3, 0  ;;  %v350_v10 = vand.u32 15, %v320_v4  ;;  %v364_v11 = vand.u32 15, %v322_v5  ;;  %s3057_s13 = sshll.u32 %s301_s12, 3  ;;  %v357_v14 = vand.u32 15, %v321_v6  ;;  %3146 = vmatpush3.bf16.msra.mxu0 %v3436_v20  ;;  %s5202_s12 = smov 96  }
  0x1d   : > { %vm788_vm4 = vmpackc.low %vm3696_vm0, %vm3696_vm0  ;;  %s3717_s20 = scalar_lea.vmem %s5168_s0, %s3057_s13  ;;  %v378_v29 = vand.u32 15, %v324_v12  ;;  %v371_v30 = vand.u32 15, %v3709_v13  ;;  %v5230_v12 = vmov 0  ;;  %3147 = vmatprep.subr.bf16.mxu0 %v3437_v9  ;;  %v5242_v13 = vmov 0  ;;  %s292_s18 = sand.u32 1, %s3537_s22  }
  0x1e   : > { %vm600_vm6 = vcmp.ne.s32.totalorder %v350_v10, 15  ;;  %v808_v17 = vsel %vm788_vm4, 65537, %v3564_v16  ;;  %vm3725_vm8 = vcmp.ne.s32.totalorder %v364_v11, 15  ;;  %v619_v21 = vld [vmem:[%s3717_s20] sm:$0xff]  ;;  %v620_v22 = vld [vmem:[%s3717_s20 + $0x8] sm:$0xff]  ;;  %v621_v23 = vld [vmem:[%s3717_s20 + $0x10] sm:$0xff] }
  0x1f   : > { %vm962_vm7 = vmpackc.low %vm600_vm6, %vm600_vm6  ;;  %v3736_v25 = vpack.c.bf16 %v620_v22, %v619_v21  ;;  %v622_v26 = vld [vmem:[%s3717_s20 + $0x18] sm:$0xff]  ;;  %v623_v27 = vld [vmem:[%s3717_s20 + $0x20] sm:$0xff]  ;;  %v3061_v34 = vcombine.low %v808_v17, %v3723_v18  ;;  %vm3755_vm11 = vcmp.ne.s32.totalorder %v357_v14, 0  ;;  %vm3783_vm13 = vcmp.ne.s32.totalorder %v378_v29, 15  ;;  %s1898_s29 = scalar_select %p1877_p0, 1, 0 }
  0x20   : > { %v982_v24 = vsel %vm962_vm7, 65537, %v3564_v16  ;;  %v624_v28 = vld [vmem:[%s3717_s20 + $0x28] sm:$0xff]  ;;  %v3745_v32 = vpack.c.bf16 %v622_v26, %v621_v23  ;;  %v625_v35 = vld [vmem:[%s3717_s20 + $0x30] sm:$0xff]  ;;  %v626_v36 = vld [vmem:[%s3717_s20 + $0x38] sm:$0xff]  ;;  %vm3839_vm4 = vcmp.ne.s32.totalorder %v371_v30, 0  ;;  %v325_v14 = vadd.s32 48, %v3685_v2 }
  0x21   : > { %v3747_v33 = vpack.c.bf16 %v624_v28, %v623_v27  ;;  %vm964_vm10 = vmpackc.low %vm3725_vm8, %vm3725_vm8  ;;  %1135 = vrot.lane.b32.xlu0 %v3736_v25, %s3565_s9  ;;  %v657_v38 = vshrl.u32 %v3736_v25, 16  ;;  %v660_v39 = vshll.u32 %v3736_v25, 16  ;;  %v3763_v40 = vpack.c.bf16 %v626_v36, %v625_v35  ;;  %v627_v63 = vld [vmem:[%s3717_s20 + $0x40] sm:$0xff]  ;;  %v628_v5 = vld [vmem:[%s3717_s20 + $0x48] sm:$0xff] }
  0x22   : > { %v3071_v41 = vcombine.low %v3723_v18, %v982_v24  ;;  %1137 = vrot.lane.b32.xlu1 %v3745_v32, %s3565_s9  ;;  %v664_v44 = vshrl.u32 %v3745_v32, 16  ;;  %v667_v45 = vshll.u32 %v3745_v32, 16  ;;  %v984_v48 = vsel %vm964_vm10, 65537, %v3564_v16  ;;  %vm790_vm15 = vmpackc.low %vm3755_vm11, %vm3755_vm11  ;;  %v3438_v10 = vld [vmem:[%s5170_s2 + $0x28] sm:$0xff]   ;;  %v3439_v24 = vld [vmem:[%s5170_s2 + $0x60] sm:$0xff]  }
  0x23   : > { %v672_v42 = vshrl.u32 %v3747_v33, 16  ;;  %v675_v43 = vshll.u32 %v3747_v33, 16  ;;  %v879_v46 = vrot.slane %v660_v39, 1  ;;  %v683_v47 = vshll.u32 %v3763_v40, 16  ;;  %vm966_vm2 = vmpackc.low %vm3783_vm13, %vm3783_vm13  ;;  %3148 = vmatpush3.bf16.msra.mxu0 %v3438_v10  ;;  %v3440_v28 = vld [vmem:[%s5170_s2 + $0x20] sm:$0xff]  }
  0x24   : > { %v680_v49 = vshrl.u32 %v3763_v40, 16  ;;  %v881_v52 = vrot.slane %v667_v45, 1  ;;  %vm3789_vm14 = vcmp.ne.s16.totalorder %v3061_v34, 0  ;;  %v3072_v57 = vcombine.low %v3723_v18, %v984_v48  ;;  %vm792_vm5 = vmpackc.low %vm3839_vm4, %vm3839_vm4  ;;  %3149 = vmatprep.subr.bf16.mxu0 %v3439_v24  ;;  %v3441_v34 = vld [vmem:[%s5170_s2 + $0x58] sm:$0xff]   ;;  %v632_v24 = vld [vmem:[%s3717_s20 + $0x68] sm:$0xff] }
  0x25   : > { %v674_v50 = vrot.slane %v672_v42, 7  ;;  %v884_v53 = vrot.slane %v675_v43, 1  ;;  %1277 = vrot.lane.b32.xlu0 %v3747_v33, %s5202_s12  ;;  %v880_v56 = vor.u32 %v879_v46, %v657_v38  ;;  %v3796_v58 = vrot.slane %v664_v44, 7  ;;  %v630_v46 = vld [vmem:[%s3717_s20 + $0x58] sm:$0xff] }
  0x26   : > { %v883_v60 = vor.u32 %v881_v52, %v664_v44  ;;  %vm3803_vm0 = vcmp.ne.s16.totalorder %v3071_v41, 0  ;;  %v3807_v62 = vrot.slane %v680_v49, 7  ;;  %v887_v3 = vrot.slane %v683_v47, 1  ;;  %v629_v41 = vld [vmem:[%s3717_s20 + $0x50] sm:$0xff] }
  0x27   : > { %v3801_v59 = vor.u32 %v675_v43, %v674_v50  ;;  %v5229_v61 = vsel %vm3803_vm0, 4294967295, %v5228_v61  ;;  %v882_v0 = vsel %vm5177_vm9, %v880_v56, %v881_v52  ;;  %v886_v1 = vor.u32 %v884_v53, %v672_v42  ;;  %3150 = vmatpush3.bf16.msra.mxu0 %v3440_v28 }
  0x28   : > { %v3812_v4 = vor.u32 %v667_v45, %v3796_v58  ;;  %v3819_v7 = vsel %vm5177_vm9, %v883_v60, %v884_v53  ;;  %v810_v8 = vsel %vm790_vm15, 65537, %v3564_v16  ;;  %vm3832_vm1 = vcmp.ne.s16.totalorder %v3072_v57, 0  ;;  %3151 = vmatprep.subr.bf16.mxu0 %v3441_v34 }
  0x29   : > { %v1098_v6 = vsel %vm3779_vm12, 0, %v3801_v59  ;;  %1279 = vrot.lane.b32.xlu0 %v3763_v40, %s5202_s12  ;;  %v5231_v12 = vsel %vm3832_vm1, 4294967295, %v5230_v12  ;;  %v1078_v15 = vsel %vm3803_vm0, %v3819_v7, 0  ;;  %v1041_v17 = vsel %vm3803_vm0, %v882_v0, 0 }
  0x2a   : > { %v1099_v11 = vsel %vm3789_vm14, %v1098_v6, 0  ;;  %v685_v19 = vor.u32 %v683_v47, %v3807_v62  ;;  %v3852_v20 = vsel %vm5177_vm9, %v886_v1, %v887_v3  ;;  %v1061_v21 = vsel %vm3779_vm12, 0, %v3812_v4  ;;  %v3442_v47 = vld [vmem:[%s5170_s2 + $0x18] sm:$0xff]  }
  0x2b   : > { %1255 = vrot.lane.b32.xlu1 %v1099_v11, %s5204_s19  ;;  %v3062_v22 = vcombine.low %v810_v8, %v3723_v18  ;;  %v3858_v23 = vpack.c.bf16 %v628_v5, %v627_v63  ;;  %v986_v26 = vsel %vm966_vm2, 65537, %v3564_v16  ;;  %v392_v27 = vand.u32 15, %v3743_v31  ;;  %v3443_v63 = vld [vmem:[%s5170_s2 + $0x50] sm:$0xff]   ;;  %3152 = vmatpush3.bf16.msra.mxu0 %v3442_v47 }
  0x2c   : > { %v385_v30 = vand.u32 15, %v325_v14  ;;  %v1079_v31 = vsel %vm3832_vm1, %v3852_v20, 0  ;;  %v1062_v35 = vsel %vm3789_vm14, %v1061_v21, 0  ;;  %v3883_v36 = vsel %vm5175_vm3, %v674_v50, %v685_v19  ;;  %3153 = vmatprep.subr.bf16.mxu0 %v3443_v63  ;;  %v631_v19 = vld [vmem:[%s3717_s20 + $0x60] sm:$0xff] }
  0x2d   : > { %1225 = vrot.lane.b32.xlu0 %v1078_v15, %s3565_s9  ;;  %v691_v29 = vshll.u32 %v3858_v23, 16  ;;  %v688_v37 = vshrl.u32 %v3858_v23, 16  ;;  %vm3887_vm6 = vcmp.ne.s16.totalorder %v3062_v22, 0  ;;  %v889_v43 = vor.u32 %v887_v3, %v680_v49  ;;  %v3446_v15 = vld [vmem:[%s5170_s2 + $0x8] sm:$0xff]  }
  0x2e   : > { %v3073_v45 = vcombine.low %v3723_v18, %v986_v26  ;;  %v812_v48 = vsel %vm792_vm5, 65537, %v3564_v16  ;;  %vm3904_vm7 = vcmp.ne.s32.totalorder %v392_v27, 15  ;;  %vm3909_vm8 = vcmp.ne.s32.totalorder %v385_v30, 0  ;;  %v3448_v26 = vld [vmem:[%s5170_s2 + $0x88] sm:$0xff]  }
  0x2f   : > { %1165 = vrot.lane.b32.xlu1 %v1041_v17, %s5204_s19  ;;  %v890_v44 = vrot.slane %v691_v29, 1  ;;  %v3902_v50 = vrot.slane %v688_v37, 7  ;;  %v328_v53 = vadd.s32 72, %v3685_v2  ;;  %v1100_v54 = vsel %vm3887_vm6, %v3883_v36, 0  ;;  %vm968_vm11 = vmpackc.low %vm3904_vm7, %vm3904_vm7  ;;  %3305 = vmatprep.subr.bf16.mxu1 %v3448_v26 }
  0x30   : > { %v1042_v56 = vsel %vm3832_vm1, %v3819_v7, 0  ;;  %v3924_v57 = vsel %vm5175_vm3, %v3796_v58, %v3801_v59  ;;  %v3926_v60 = vpack.c.bf16 %v630_v46, %v629_v41  ;;  %vm3934_vm10 = vcmp.ne.s16.totalorder %v3073_v45, 0  ;;  %v3444_v58 = vld [vmem:[%s5170_s2 + $0x10] sm:$0xff]   ;;  %v3445_v7 = vld [vmem:[%s5170_s2 + $0x48] sm:$0xff]   ;;  %vm794_vm13 = vmpackc.low %vm3909_vm8, %vm3909_vm8  ;;  %3306 = vmatpush3.bf16.msra.mxu1 %v3448_v26 }
  0x31   : > { %1227 = vrot.lane.b32.xlu0 %v1079_v31, %s3565_s9  ;;  %v3932_v0 = vsel %vm5177_vm9, %v889_v43, %v890_v44  ;;  %v5240_v1 = vmov 0  ;;  %v3063_v3 = vcombine.low %v812_v48, %v3723_v18  ;;  %v693_v5 = vor.u32 %v691_v29, %v3902_v50  ;;  %3154 = vmatpush3.bf16.msra.mxu0 %v3444_v58  ;;  %v3449_v43 = vld [vmem:[%s5170_s2] sm:$0xff]   ;;  %v634_v58 = vld [vmem:[%s3717_s20 + $0x78] sm:$0xff] }
  0x32   : > { %v5241_v1 = vsel %vm3934_vm10, 4294967295, %v5240_v1  ;;  %v696_v59 = vshrl.u32 %v3926_v60, 16  ;;  %v327_v6 = vadd.s32 64, %v3685_v2  ;;  %v1080_v8 = vsel %vm3934_vm10, %v3932_v0, 0  ;;  %3155 = vmatprep.subr.bf16.mxu0 %v3445_v7 }
  0x33   : > { %1195 = vrot.lane.b32.xlu1 %v1062_v35, %s5202_s12  ;;  %v1063_v9 = vsel %vm3887_vm6, %v3924_v57, 0  ;;  %v699_v10 = vshll.u32 %v3926_v60, 16  ;;  %v406_v11 = vand.u32 15, %v328_v53  ;;  %vm3963_vm15 = vcmp.ne.s16.totalorder %v3063_v3, 0 }
  0x34   : > { %v5243_v13 = vsel %vm3963_vm15, 4294967295, %v5242_v13  ;;  %v3969_v14 = vsel %vm5175_vm3, %v3807_v62, %v693_v5  ;;  %v988_v17 = vsel %vm968_vm11, 65537, %v3564_v16  ;;  %v3979_v21 = vrot.slane %v696_v59, 7  ;;  %v3447_v62 = vld [vmem:[%s5170_s2 + $0x40] sm:$0xff]  }
  0x35   : > { %1257 = vrot.lane.b32.xlu0 %v1100_v54, %s5204_s19  ;;  %v814_v22 = vsel %vm794_vm13, 65537, %v3564_v16  ;;  %v1101_v27 = vsel %vm3963_vm15, %v3969_v14, 0  ;;  %vm3993_vm2 = vcmp.ne.s32.totalorder %v406_v11, 15  ;;  %v892_v29 = vor.u32 %v890_v44, %v688_v37  ;;  %3156 = vmatpush3.bf16.msra.mxu0 %v3446_v15  ;;  %v3450_v37 = vld [vmem:[%s5170_s2 + $0x80] sm:$0xff]  }
  0x36   : > { %v893_v30 = vrot.slane %v699_v10, 1  ;;  %v3074_v34 = vcombine.low %v3723_v18, %v988_v17  ;;  %v399_v31 = vand.u32 15, %v327_v6  ;;  %v3998_v35 = vpack.c.bf16 %v632_v24, %v631_v19  ;;  %3157 = vmatprep.subr.bf16.mxu0 %v3447_v62  ;;  %vm970_vm4 = vmpackc.low %vm3993_vm2, %vm3993_vm2  ;;  %3307 = vmatprep.subr.bf16.mxu1 %v3450_v37  ;;  %v639_v19 = vld [vmem:[%s3717_s20 + $0xa0] sm:$0xff] }
  0x37   : > { %1167 = vrot.lane.b32.xlu1 %v1042_v56, %s5204_s19  ;;  %v330_v41 = vadd.s32 88, %v3685_v2  ;;  %v701_v44 = vor.u32 %v699_v10, %v3979_v21  ;;  %v3064_v45 = vcombine.low %v814_v22, %v3723_v18  ;;  %v1043_v46 = vsel %vm3934_vm10, %v3852_v20, 0  ;;  %v633_v56 = vld [vmem:[%s3717_s20 + $0x70] sm:$0xff]  ;;  %3308 = vmatpush3.bf16.msra.mxu1 %v3450_v37 }
  0x38   : > { %v4019_v47 = vsel %vm5177_vm9, %v892_v29, %v893_v30  ;;  %vm4021_vm5 = vcmp.ne.s16.totalorder %v3074_v34, 0  ;;  %v5246_v48 = vmov 0  ;;  %vm4025_vm7 = vcmp.ne.s32.totalorder %v399_v31, 0 }
  0x39   : > { %1229 = vrot.lane.b32.xlu0 %v1080_v8, %s3565_s9  ;;  %v5247_v48 = vsel %vm4021_vm5, 4294967295, %v5246_v48  ;;  %3158 = vmatpush3.bf16.msra.mxu0 %v3449_v43  ;;  %v707_v52 = vshll.u32 %v3998_v35, 16  ;;  %v990_v53 = vsel %vm970_vm4, 65537, %v3564_v16  ;;  %v420_v54 = vand.u32 15, %v330_v41  ;;  %vm796_vm11 = vmpackc.low %vm4025_vm7, %vm4025_vm7 }
  0x3a   : > { %v4036_v63 = vsel %vm5175_vm3, %v3902_v50, %v701_v44  ;;  %vm4038_vm8 = vcmp.ne.s16.totalorder %v3064_v45, 0  ;;  %v5250_v3 = vmov 0  ;;  %v704_v5 = vshrl.u32 %v3998_v35, 16 }
  0x3b   : > { %1197 = vrot.lane.b32.xlu1 %v1063_v9, %s5202_s12  ;;  %v5251_v3 = vsel %vm4038_vm8, 4294967295, %v5250_v3  ;;  %v331_v6 = vadd.s32 96, %v3685_v2  ;;  %v1081_v7 = vsel %vm4021_vm5, %v4019_v47, 0  ;;  %v334_v50 = vadd.s32 120, %v3685_v2 }
  0x3c   : > { %v1064_v8 = vsel %vm3963_vm15, %v3883_v36, 0  ;;  %v895_v9 = vor.u32 %v893_v30, %v696_v59  ;;  %v3075_v10 = vcombine.low %v3723_v18, %v990_v53  ;;  %v1102_v15 = vsel %vm4038_vm8, %v4036_v63, 0 }
  0x3d   : > { %1259 = vrot.lane.b32.xlu0 %v1101_v27, %s5204_s19  ;;  %v427_v11 = vand.u32 15, %v331_v6  ;;  %v896_v17 = vrot.slane %v707_v52, 1  ;;  %vm4062_vm13 = vcmp.ne.s32.totalorder %v420_v54, 15  ;;  %v4066_v22 = vpack.c.bf16 %v634_v58, %v633_v56 }
  0x3e   : > { %v4069_v24 = vrot.slane %v704_v5, 7  ;;  %v816_v59 = vsel %vm796_vm11, 65537, %v3564_v16  ;;  %v448_v62 = vand.u32 15, %v334_v50  ;;  %v329_v26 = vadd.s32 80, %v3685_v2  ;;  %vm972_vm3 = vmpackc.low %vm4062_vm13, %vm4062_vm13 }
  0x3f   : > { %1139 = vrot.lane.b32.xlu1 %v3747_v33, %s3565_s9  ;;  %vm591_vm2 = vcmp.ne.s32.totalorder %v427_v11, 0  ;;  %v333_v27 = vadd.s32 112, %v3685_v2  ;;  %vm4075_vm7 = vcmp.ne.s16.totalorder %v3075_v10, 0  ;;  %v5254_v28 = vmov 0 }
  0x40   : > { %vm800_vm4 = vmpackc.low %vm591_vm2, %vm591_vm2  ;;  %v5255_v28 = vsel %vm4075_vm7, 4294967295, %v5254_v28  ;;  %vm614_vm11 = vcmp.ne.s32.totalorder %v448_v62, 15  ;;  %v4086_v30 = vsel %vm5177_vm9, %v895_v9, %v896_v17  ;;  %v715_v34 = vshll.u32 %v4066_v22, 16  ;;  %v641_v62 = vld [vmem:[%s3717_s20 + $0xb0] sm:$0xff] }
  0x41   : > { %1281 = vrot.lane.b32.xlu0 %v3858_v23, %s5202_s12  ;;  %v4083_v29 = vsel %vm800_vm4, 65537, %v3564_v16  ;;  %vm976_vm2 = vmpackc.low %vm614_vm11, %vm614_vm11  ;;  %v441_v41 = vand.u32 15, %v333_v27  ;;  %v709_v43 = vor.u32 %v707_v52, %v4069_v24  ;;  %v3065_v37 = vcombine.low %v816_v59, %v3723_v18 }
  0x42   : > { %v4095_v44 = vsel %vm976_vm2, 65537, %v3564_v16  ;;  %v336_v45 = vadd.s32 136, %v3685_v2  ;;  %v1044_v53 = vsel %vm4021_vm5, %v3932_v0, 0  ;;  %v898_v52 = vor.u32 %v896_v17, %v704_v5  ;;  %v636_v17 = vld [vmem:[%s3717_s20 + $0x88] sm:$0xff] }
  0x43   : > { %1169 = vrot.lane.b32.xlu1 %v1043_v46, %s5204_s19  ;;  %v413_v46 = vand.u32 15, %v329_v26  ;;  %vm593_vm4 = vcmp.ne.s32.totalorder %v441_v41, 0  ;;  %v992_v54 = vsel %vm972_vm3, 65537, %v3564_v16  ;;  %v1082_v58 = vsel %vm4075_vm7, %v4086_v30, 0  ;;  %v642_v41 = vld [vmem:[%s3717_s20 + $0xb8] sm:$0xff] }
  0x44   : > { %vm802_vm11 = vmpackc.low %vm593_vm4, %vm593_vm4  ;;  %v462_v56 = vand.u32 15, %v336_v45  ;;  %v5176_v6 = vshrl.u32 %v4066_v22, 16  ;;  %v332_v5 = vadd.s32 104, %v3685_v2  ;;  %vm5256_vm3 = vsmask.f32 256  ;;  %v640_v45 = vld [vmem:[%s3717_s20 + $0xa8] sm:$0xff] }
  0x45   : > { %1231 = vrot.lane.b32.xlu0 %v1081_v7, %s3565_s9  ;;  %v4117_v7 = vsel %vm802_vm11, 65537, %v3564_v16  ;;  %v4123_v50 = vsel %vm5256_vm3, %v3979_v21, %v709_v43  ;;  %vm4125_vm13 = vcmp.ne.s16.totalorder %v3065_v37, 0  ;;  %v4129_v9 = vrot.slane %v715_v34, 1  ;;  %v635_v21 = vld [vmem:[%s3717_s20 + $0x80] sm:$0xff] }
  0x46   : > { %v3076_v11 = vcombine.low %v3723_v18, %v992_v54  ;;  %vm4135_vm2 = vcmp.ne.s32.totalorder %v413_v46, 0  ;;  %vm616_vm4 = vcmp.ne.s32.totalorder %v462_v56, 15  ;;  %v335_v59 = vadd.s32 128, %v3685_v2 }
  0x47   : > { %1199 = vrot.lane.b32.xlu1 %v1064_v8, %s5202_s12  ;;  %v1065_v26 = vsel %vm4038_vm8, %v3969_v14, 0  ;;  %vm978_vm11 = vmpackc.low %vm616_vm4, %vm616_vm4  ;;  %v338_v27 = vadd.s32 152, %v3685_v2  ;;  %v4151_v43 = vrot.slane %v5176_v6, 7  ;;  %v434_v37 = vand.u32 15, %v332_v5 }
  0x48   : > { %v4155_v46 = vsel %vm978_vm11, 65537, %v3564_v16  ;;  %vm798_vm3 = vmpackc.low %vm4135_vm2, %vm4135_vm2  ;;  %v455_v56 = vand.u32 15, %v335_v59  ;;  %v4169_v5 = vsel %vm5177_vm9, %v898_v52, %v4129_v9  ;;  %vm4171_vm4 = vcmp.ne.s16.totalorder %v3076_v11, 0 }
  0x49   : > { %1261 = vrot.lane.b32.xlu0 %v1102_v15, %s5204_s19  ;;  %v3079_v54 = vcombine.low %v3723_v18, %v4155_v46  ;;  %v476_v10 = vand.u32 15, %v338_v27  ;;  %v337_v49 = vadd.s32 144, %v3685_v2  ;;  %v4176_v15 = vpack.c.bf16 %v642_v41, %v641_v62  ;;  %v638_v41 = vld [vmem:[%s3717_s20 + $0x98] sm:$0xff] }
  0x4a   : > { %v4178_v31 = vpack.c.bf16 %v636_v17, %v635_v21  ;;  %v4180_v6 = vpack.c.bf16 %v640_v45, %v639_v19  ;;  %vm595_vm2 = vcmp.ne.s32.totalorder %v455_v56, 0  ;;  %v717_v59 = vor.u32 %v715_v34, %v4151_v43 }
  0x4b   : > { %1141 = vrot.lane.b32.xlu1 %v3763_v40, %s3565_s9  ;;  %vm618_vm11 = vcmp.ne.s32.totalorder %v476_v10, 15  ;;  %vm4184_vm9 = vcmp.ne.s32.totalorder %v434_v37, 15  ;;  %vm804_vm8 = vmpackc.low %vm595_vm2, %vm595_vm2  ;;  %v469_v11 = vand.u32 15, %v337_v49  ;;  %v5182_v10 = vshrl.u32 %v4176_v15, 16 }
  0x4c   : > { %v4190_v2 = vsel %vm804_vm8, 65537, %v3564_v16  ;;  %v5183_v21 = vshrl.u32 %v4180_v6, 16  ;;  %vm980_vm15 = vmpackc.low %vm618_vm11, %vm618_vm11  ;;  %v5184_v34 = vshll.u32 %v4176_v15, 16  ;;  %v659_v19 = vrot.slane %v657_v38, 7 }
  0x4d   : > { %1283 = vrot.lane.b32.xlu0 %v3926_v60, %s5202_s12  ;;  %v3069_v17 = vcombine.low %v4190_v2, %v3723_v18  ;;  %v4200_v49 = vsel %vm980_vm15, 65537, %v3564_v16  ;;  %v1045_v62 = vsel %vm4075_vm7, %v4019_v47, 0  ;;  %v1091_v37 = vrot.slane %v5182_v10, 7  ;;  %vm974_vm15 = vmpackc.low %vm4184_vm9, %vm4184_vm9 }
  0x4e   : > { %v4218_v38 = vor.u32 %v660_v39, %v659_v19  ;;  %vm5265_vm2 = vsmask.f32 256  ;;  %v1083_v56 = vsel %vm4171_vm4, %v4169_v5, 0  ;;  %v4241_v52 = vrot.slane %v5183_v21, 7 }
  0x4f   : > { %1171 = vrot.lane.b32.xlu1 %v1044_v53, %s5204_s19  ;;  %v1103_v53 = vsel %vm4125_vm13, %v4123_v50, 0  ;;  %vm5266_vm9 = vmmov %vm5265_vm2  ;;  %v5294_v46 = vshrl.u32 %v4180_v6, 16 }
  0x50   : > { %v4236_v39 = vsel %vm5266_vm9, %v4069_v24, %v717_v59  ;;  %v637_v59 = vld [vmem:[%s3717_s20 + $0x90] sm:$0xff]  ;;  %v4594_v24 = vld [vmem:[%s5172_s4 + $0x80] sm:$0xff]  }
  0x51   : > { %1233 = vrot.lane.b32.xlu0 %v1082_v58, %s3565_s9  ;;  %v5261_v58 = vmov 0  ;;  %v4284_v21 = vpack.c.bf16 %v638_v41, %v637_v59  ;;  %v1118_v59 = vsel %vm4021_vm5, %v4086_v30, 0  ;;  %vm5297_vm5 = vsmask.f32 7424 }
  0x52   : > { %v5262_v58 = vsel %vm4171_vm4, 4294967295, %v5261_v58 }
  0x53   : > { %1201 = vrot.lane.b32.xlu1 %v1065_v26, %s5202_s12  ;;  %v818_v26 = vsel %vm798_vm3, 65537, %v3564_v16  ;;  %vm597_vm3 = vcmp.ne.s32.totalorder %v469_v11, 0  ;;  %v1094_v11 = vor.u32 %v5184_v34, %v1091_v37  ;;  %v731_v41 = vshll.u32 %v4284_v21, 16 }
  0x54   : > { %v3066_v27 = vcombine.low %v818_v26, %v3723_v18  ;;  %vm806_vm8 = vmpackc.low %vm597_vm3, %vm597_vm3  ;;  %v1066_v26 = vsel %vm4125_vm13, %v4036_v63, 0 }
  0x55   : > { %1263 = vrot.lane.b32.xlu0 %v1103_v53, %s5204_s19  ;;  %v826_v45 = vsel %vm806_vm8, 65537, %v3564_v16  ;;  %v4222_v53 = vsel %vm5265_vm2, %v659_v19, %v3812_v4  ;;  %v723_v4 = vshll.u32 %v4178_v31, 16  ;;  %vm5271_vm8 = vmmov %vm5265_vm2  ;;  %vm5189_vm2 = vcmask 261120  }
  0x56   : > { %v3070_v25 = vcombine.low %v826_v45, %v3723_v18  ;;  %vm4245_vm11 = vcmp.ne.s16.totalorder %v3066_v27, 0  ;;  %v994_v45 = vsel %vm974_vm15, 65537, %v3564_v16  ;;  %v4259_v10 = vsel %vm5271_vm8, %v4241_v52, %v1094_v11 }
  0x57   : > { %1143 = vrot.lane.b32.xlu1 %v3858_v23, %s3565_s9  ;;  %v1115_v27 = vsel %vm3803_vm0, %v3852_v20, 0  ;;  %v1116_v16 = vsel %vm3832_vm1, %v3932_v0, 0  ;;  %v1104_v20 = vsel %vm4245_vm11, %v4236_v39, 0  ;;  %v5272_v0 = vshrl.u32 %v4066_v22, 16  ;;  %vm5300_vm1 = vmmov %vm5297_vm5 }
  0x58   : > { %vm4251_vm3 = vcmp.ne.s16.totalorder %v3070_v25, 0  ;;  %3309 = vmatprep.mubr.msk.bf16.mxu1 %vm5189_vm2, %v1115_v27  ;;  %v1117_v25 = vsel %vm3934_vm10, %v4019_v47, 0  ;;  %v902_v11 = vrot.slane %v723_v4, 1  ;;  %v3077_v37 = vcombine.low %v3723_v18, %v994_v45 }
  0x59   : > { %1285 = vrot.lane.b32.xlu0 %v3998_v35, %s5202_s12  ;;  %3310 = vmatmul.mubr.msk.bf16.vlgmr.msra.gmra.mxu1 %vm5189_vm2, %v1116_v16  ;;  %v1046_v47 = vsel %vm4171_vm4, %v4086_v30, 0  ;;  %vm5273_vm15 = vsmask.f32 7424  ;;  %v1119_v16 = vsel %vm4075_vm7, %v4169_v5, 0  ;;  %vm918_vm7 = vcmask 1047552  }
  0x5a   : > { %3313 = vmatprep.mubr.msk.bf16.mxu1 %vm5189_vm2, %v1117_v25  ;;  %vm4294_vm9 = vcmp.ne.s16.totalorder %v3077_v37, 0  ;;  %vm4419_vm10 = vmand %vm918_vm7, %vm5297_vm5  ;;  %v5306_v2 = vsel %vm4251_vm3, %v4259_v10, 0  ;;  %vm5207_vm7 = vcmask 523264  }
  0x5b   : > { %1173 = vrot.lane.b32.xlu1 %v1045_v62, %s5204_s19  ;;  %v720_v62 = vshrl.u32 %v4178_v31, 16 }
  0x5d   : > { %1235 = vrot.lane.b32.xlu0 %v1083_v56, %s3565_s9  ;;  %v901_v56 = vor.u32 %v4129_v9, %v5272_v0  ;;  %v722_v27 = vrot.slane %v720_v62, 7  ;;  %v904_v25 = vor.u32 %v902_v11, %v720_v62  ;;  %v1055_v62 = vshll.u32 %v4180_v6, 16 }
  0x5f   : > { %1203 = vrot.lane.b32.xlu1 %v1066_v26, %s5202_s12  ;;  %v903_v9 = vsel %vm5273_vm15, %v901_v56, %v902_v11  ;;  %v5274_v26 = vmov 0  ;;  %v725_v45 = vor.u32 %v723_v4, %v722_v27  ;;  %v1067_v4 = vsel %vm4245_vm11, %v4123_v50, 0 }
  0x60   : > { %v5275_v26 = vsel %vm4294_vm9, 4294967295, %v5274_v26  ;;  %v1084_v37 = vsel %vm4294_vm9, %v903_v9, 0  ;;  %v905_v56 = vrot.slane %v731_v41, 1 }
  0x61   : > { %1265 = vrot.lane.b32.xlu0 %v1104_v20, %s5204_s19  ;;  %3314 = vmatmul.mubr.msk.bf16.gmra.mxu1 %vm5189_vm2, %v1118_v59  ;;  %v4316_v30 = vsel %vm5271_vm8, %v4151_v43, %v725_v45  ;;  %v5276_v20 = vcombine.low %v4083_v29, %v3723_v18  ;;  %vm5279_vm8 = vsmask.f32 7424  ;;  %v1120_v45 = vsel %vm4171_vm4, %v903_v9, 0 }
  0x62   : > { %3317 = vmatprep.mubr.msk.bf16.mxu1 %vm5189_vm2, %v1119_v16  ;;  %v906_v29 = vsel %vm5279_vm8, %v904_v25, %v905_v56  ;;  %v5280_v25 = vcombine.low %v3723_v18, %v4095_v44  ;;  %vm5283_vm4 = vsmask.f32 7424 }
  0x63   : > { %1145 = vrot.lane.b32.xlu1 %v3926_v60, %s3565_s9  ;;  %vm4321_vm15 = vcmp.ne.s16.totalorder %v5276_v20, 0  ;;  %v1121_v59 = vsel %vm4294_vm9, %v906_v29, 0  ;;  %v5281_v20 = vmov 0 }
  0x64   : > { %v1105_v43 = vsel %vm4321_vm15, %v4316_v30, 0  ;;  %vm4348_vm8 = vcmp.ne.s16.totalorder %v5280_v25, 0  ;;  %v1068_v44 = vsel %vm4321_vm15, %v4236_v39, 0 }
  0x65   : > { %1287 = vrot.lane.b32.xlu0 %v4066_v22, %s5202_s12  ;;  %v5282_v20 = vsel %vm4348_vm8, 4294967295, %v5281_v20 }
  0x67   : > { %1175 = vrot.lane.b32.xlu1 %v1046_v47, %s5204_s19  ;;  %v728_v47 = vshrl.u32 %v4284_v21, 16 }
  0x69   : > { %1237 = vrot.lane.b32.xlu0 %v1084_v37, %s3565_s9  ;;  %v730_v11 = vrot.slane %v728_v47, 7  ;;  %v907_v16 = vor.u32 %v905_v56, %v728_v47  ;;  %v1072_v37 = vrot.slane %v1055_v62, 1  ;;  %3318 = vmatmul.mubr.msk.bf16.gmra.mxu1 %vm5189_vm2, %v1120_v45  ;;  %v1085_v56 = vsel %vm4348_vm8, %v906_v29, 0 }
  0x6a   : > { %3321 = vmatprep.mubr.msk.bf16.mxu1 %vm5189_vm2, %v1121_v59 }
  0x6b   : > { %1205 = vrot.lane.b32.xlu1 %v1067_v4, %s5202_s12  ;;  %v1047_v4 = vsel %vm4294_vm9, %v4169_v5, 0  ;;  %v733_v34 = vor.u32 %v731_v41, %v730_v11  ;;  %v1073_v5 = vsel %vm5283_vm4, %v907_v16, %v1072_v37  ;;  %vm5284_vm9 = vsmask.f32 256 }
  0x6c   : > { %v5285_v41 = vcombine.low %v4117_v7, %v3723_v18  ;;  %v1122_v45 = vsel %vm4348_vm8, %v1073_v5, 0  ;;  %vm5288_vm4 = vcmask 261120  }
  0x6d   : > { %1267 = vrot.lane.b32.xlu0 %v1105_v43, %s5204_s19  ;;  %v4363_v47 = vsel %vm5284_vm9, %v722_v27, %v733_v34  ;;  %vm4383_vm9 = vcmp.ne.s16.totalorder %v3069_v17, 0  ;;  %v1048_v27 = vsel %vm4348_vm8, %v903_v9, 0  ;;  %v1057_v17 = vor.u32 %v1055_v62, %v4241_v52 }
  0x6e   : > { %vm4368_vm2 = vcmp.ne.s16.totalorder %v5285_v41, 0  ;;  %v876_v34 = vsel %vm4383_vm9, %v4316_v30, 0  ;;  %vm5295_vm8 = vsmask.f32 256  ;;  %v5296_v62 = vshrl.u32 %v4176_v15, 16 }
  0x6f   : > { %1147 = vrot.lane.b32.xlu1 %v3998_v35, %s3565_s9  ;;  %v1106_v59 = vsel %vm4368_vm2, %v4363_v47, 0  ;;  %v1058_v52 = vsel %vm5295_vm8, %v730_v11, %v1057_v17  ;;  %v5298_v41 = vmov 0 }
  0x70   : > { %v5299_v41 = vsel %vm4419_vm10, 4294967295, %v5298_v41 }
  0x71   : > { %1289 = vrot.lane.b32.xlu0 %v4178_v31, %s5202_s12  ;;  %3322 = vmatmul.mubr.msk.bf16.gmra.mxu1 %vm5288_vm4, %v1122_v45  ;;  %vm4398_vm4 = vcmp.ne.s16.totalorder %v3079_v54, 0  ;;  %v1074_v54 = vor.u32 %v1072_v37, %v5294_v46  ;;  %v5301_v37 = vcombine.low %v3723_v18, %v4200_v49  ;;  %v877_v49 = vsel %vm4251_vm3, %v4363_v47, 0 }
  0x72   : > { %v1086_v9 = vsel %vm4398_vm4, %v1073_v5, 0  ;;  %v1049_v17 = vsel %vm4398_vm4, %v906_v29, 0  ;;  %v920_v29 = vsel %vm4419_vm10, %v907_v16, 0 }
  0x73   : > { %1177 = vrot.lane.b32.xlu1 %v1047_v4, %s5204_s19  ;;  %v5293_v4 = vshll.u32 %v4176_v15, 16  ;;  %vm4428_vm0 = vcmp.ne.s16.totalorder %v5301_v37, 0 }
  0x75   : > { %1239 = vrot.lane.b32.xlu0 %v1085_v56, %s3565_s9  ;;  %v1109_v25 = vrot.slane %v5293_v4, 1  ;;  %v1069_v56 = vsel %vm4368_vm2, %v4316_v30, 0  ;;  %v1077_v4 = vsel %vm4419_vm10, %v1074_v54, 0 }
  0x77   : > { %1207 = vrot.lane.b32.xlu1 %v1068_v44, %s5202_s12  ;;  %v1111_v44 = vor.u32 %v1109_v25, %v5296_v62  ;;  %v1110_v45 = vsel %vm5300_vm1, %v1074_v54, %v1109_v25  ;;  %vm5304_vm1 = vcmask 261120   ;;  %v1087_v25 = vsel %vm4428_vm0, %v1077_v4, 0 }
  0x78   : > { %v1123_v11 = vsel %vm4398_vm4, %v1110_v45, 0  ;;  %vm5305_vm5 = vmmov %vm5304_vm1  ;;  %v1050_v54 = vsel %vm4428_vm0, %v920_v29, 0  ;;  %v1071_v62 = vsel %vm4251_vm3, %v1058_v52, 0  ;;  %v747_v45 = vsel %vm3779_vm12, 0, %v4218_v38 }
  0x79   : > { %1269 = vrot.lane.b32.xlu0 %v1106_v59, %s5204_s19  ;;  %v1114_v59 = vsel %vm4419_vm10, %v1111_v44, 0  ;;  %3325 = vmatprep.mubr.msk.bf16.mxu1 %vm5304_vm1, %v1123_v11  ;;  %vm5307_vm8 = vmmov %vm5304_vm1 }
  0x7a   : > { %v1124_v18 = vsel %vm4428_vm0, %v1114_v59, 0  ;;  %vm5206_vm0 = vcmask 785408   ;;  %vm5308_vm4 = vmmov %vm5304_vm1 }
  0x7b   : > { %1149 = vrot.lane.b32.xlu1 %v4066_v22, %s3565_s9  ;;  %3326 = vmatmul.mubr.msk.bf16.gmra.mxu1 %vm5305_vm5, %v1124_v18  ;;  %vm5309_vm5 = vmmov %vm5304_vm1 }
  0x7d   : > { %1291 = vrot.lane.b32.xlu0 %v4284_v21, %s5202_s12 }
  0x7f   : > { %1179 = vrot.lane.b32.xlu1 %v1048_v27, %s5204_s19  ;;  %v1107_v27 = vsel %vm4383_vm9, %v1058_v52, 0 }
  0x81   : > { %1241 = vrot.lane.b32.xlu0 %v1086_v9, %s3565_s9  ;;  %v1070_v9 = vsel %vm4383_vm9, %v4363_v47, 0  ;;  %vm5320_vm9 = vmmov %vm5304_vm1 }
  0x83   : > { %1209 = vrot.lane.b32.xlu1 %v1069_v56, %s5202_s12 }
  0x85   : > { %1271 = vrot.lane.b32.xlu0 %v1107_v27, %s5204_s19 }
  0x87   : > { %1151 = vrot.lane.b32.xlu1 %v4178_v31, %s3565_s9 }
  0x89   : > { %1293 = vrot.lane.b32.xlu0 %v4180_v6, %s5202_s12 }
  0x8b   : > { %1181 = vrot.lane.b32.xlu1 %v1049_v17, %s5204_s19 }
  0x8d   : > { %1243 = vrot.lane.b32.xlu0 %v1087_v25, %s3565_s9 }
  0x8f   : > { %1211 = vrot.lane.b32.xlu1 %v1070_v9, %s5202_s12 }
  0x91   : > { %1273 = vrot.lane.b32.xlu0 %v5306_v2, %s5204_s19 }
  0x93   : > { %1153 = vrot.lane.b32.xlu1 %v4284_v21, %s3565_s9  ;;  %v1136_v46 = vpop.permute.xlu0 %1135 }
  0x94   : > { %v1138_v56 = vpop.permute.xlu1 %1137 }
  0x95   : > { %1295 = vrot.lane.b32.xlu0 %v4176_v15, %s5202_s12  ;;  %v868_v15 = vsel %vm3789_vm14, %v747_v45, 0 }
  0x96   : > { %v1300_v27 = vsel %vm5308_vm4, %v868_v15, %v1136_v46  ;;  %vm5311_vm4 = vnez %v5243_v13 }
  0x97   : > { %1183 = vrot.lane.b32.xlu1 %v1050_v54, %s5204_s19  ;;  %v1278_v16 = vpop.permute.xlu0 %1277 }
  0x9b   : > { %1213 = vrot.lane.b32.xlu1 %v1071_v62, %s5202_s12  ;;  %v1280_v10 = vpop.permute.xlu0 %1279 }
  0x9d   : > { %v1256_v44 = vpop.permute.xlu1 %1255 }
  0x9f   : > { %v1226_v37 = vpop.permute.xlu0 %1225 }
  0xa0   : > { %v1381_v5 = vsel %vm5307_vm8, %v3745_v32, %v1226_v37  ;;  %v869_v32 = vsel %vm3887_vm6, %v4222_v53, 0  ;;  %vm5310_vm8 = vmmov %vm5304_vm1 }
  0xa1   : > { %v1166_v11 = vpop.permute.xlu1 %1165  ;;  %v1401_v52 = vsel %vm5207_vm7, %v1381_v5, %v1256_v44  ;;  %v1303_v54 = vsel %vm5309_vm5, %v869_v32, %v1138_v56  ;;  %vm5312_vm5 = vmmov %vm5304_vm1 }
  0xa2   : > { %v1421_v59 = vsel %vm5206_vm0, %v1401_v52, %v1278_v16  ;;  %v1330_v38 = vsel %vm5207_vm7, %v1300_v27, %v1166_v11 }
  0xa3   : > { %1663 = vmatprep.mubr.bf16.mxu0 %v1421_v59  ;;  %v1228_v18 = vpop.permute.xlu0 %1227 }
  0xa4   : > { %v1383_v4 = vsel %vm5304_vm1, %v3747_v33, %v1228_v18 }
  0xa5   : > { %v1196_v17 = vpop.permute.xlu1 %1195 }
  0xa6   : > { %v1351_v25 = vsel %vm5206_vm0, %v1330_v38, %v1196_v17 }
  0xa7   : > { %1664 = vmatmul.mubr.bf16.vlgmr.msra.gmra.mxu0 %v1351_v25  ;;  %v1258_v9 = vpop.permute.xlu0 %1257 }
  0xa8   : > { %v1403_v29 = vsel %vm5207_vm7, %v1383_v4, %v1258_v9 }
  0xa9   : > { %v1168_v2 = vpop.permute.xlu1 %1167  ;;  %v1424_v46 = vsel %vm5206_vm0, %v1403_v29, %v1280_v10  ;;  %v870_v10 = vsel %vm5311_vm4, %v3924_v57, 0 }
  0xaa   : > { %1671 = vmatprep.mubr.bf16.mxu0 %v1424_v46  ;;  %v1332_v62 = vsel %vm5207_vm7, %v1303_v54, %v1168_v2 }
  0xab   : > { %v1230_v16 = vpop.permute.xlu0 %1229 }
  0xac   : > { %v1385_v37 = vsel %vm5310_vm8, %v3763_v40, %v1230_v16  ;;  %vm5313_vm8 = vnez %v5251_v3 }
  0xad   : > { %v1198_v33 = vpop.permute.xlu1 %1197  ;;  %v871_v9 = vsel %vm5313_vm8, %v3883_v36, 0 }
  0xae   : > { %v1354_v44 = vsel %vm5206_vm0, %v1332_v62, %v1198_v33 }
  0xaf   : > { %1672 = vmatmul.mubr.bf16.gmra.mxu0 %v1354_v44  ;;  %v1260_v45 = vpop.permute.xlu0 %1259 }
  0xb0   : > { %v1405_v15 = vsel %vm5207_vm7, %v1385_v37, %v1260_v45  ;;  %v872_v37 = vsel %vm4125_vm13, %v3969_v14, 0 }
  0xb1   : > { %v1140_v53 = vpop.permute.xlu1 %1139 }
  0xb2   : > { %v1306_v52 = vsel %vm5304_vm1, %v870_v10, %v1140_v53 }
  0xb3   : > { %v1282_v5 = vpop.permute.xlu0 %1281 }
  0xb4   : > { %v1427_v11 = vsel %vm5206_vm0, %v1405_v15, %v1282_v5 }
  0xb5   : > { %v1170_v56 = vpop.permute.xlu1 %1169  ;;  %1679 = vmatprep.mubr.bf16.mxu0 %v1427_v11 }
  0xb6   : > { %v1334_v27 = vsel %vm5207_vm7, %v1306_v52, %v1170_v56 }
  0xb7   : > { %v1232_v59 = vpop.permute.xlu0 %1231 }
  0xb8   : > { %v1387_v17 = vsel %vm5312_vm5, %v3858_v23, %v1232_v59  ;;  %vm5314_vm5 = vmmov %vm5304_vm1 }
  0xb9   : > { %v1200_v18 = vpop.permute.xlu1 %1199 }
  0xba   : > { %v1357_v40 = vsel %vm5206_vm0, %v1334_v27, %v1200_v18 }
  0xbb   : > { %1680 = vmatmul.mubr.bf16.gmra.mxu0 %v1357_v40  ;;  %v1262_v38 = vpop.permute.xlu0 %1261  ;;  %v873_v40 = vsel %vm4245_vm11, %v4036_v63, 0 }
  0xbc   : > { %v1407_v57 = vsel %vm5207_vm7, %v1387_v17, %v1262_v38 }
  0xbd   : > { %v1142_v4 = vpop.permute.xlu1 %1141 }
  0xbe   : > { %v1309_v2 = vsel %vm5304_vm1, %v871_v9, %v1142_v4 }
  0xbf   : > { %v1284_v25 = vpop.permute.xlu0 %1283 }
  0xc0   : > { %v1430_v29 = vsel %vm5206_vm0, %v1407_v57, %v1284_v25 }
  0xc1   : > { %v1172_v32 = vpop.permute.xlu1 %1171  ;;  %1687 = vmatprep.mubr.bf16.mxu0 %v1430_v29 }
  0xc2   : > { %v1336_v54 = vsel %vm5207_vm7, %v1309_v2, %v1172_v32 }
  0xc3   : > { %v1234_v46 = vpop.permute.xlu0 %1233 }
  0xc4   : > { %v1389_v33 = vsel %vm5314_vm5, %v3926_v60, %v1234_v46  ;;  %vm5315_vm5 = vmmov %vm5304_vm1 }
  0xc5   : > { %v1202_v16 = vpop.permute.xlu1 %1201 }
  0xc6   : > { %v1360_v23 = vsel %vm5206_vm0, %v1336_v54, %v1202_v16  ;;  %v874_v54 = vsel %vm4321_vm15, %v4123_v50, 0 }
  0xc7   : > { %1688 = vmatmul.mubr.bf16.gmra.mxu0 %v1360_v23  ;;  %v1264_v62 = vpop.permute.xlu0 %1263 }
  0xc8   : > { %v1409_v36 = vsel %vm5207_vm7, %v1389_v33, %v1264_v62 }
  0xc9   : > { %v1144_v44 = vpop.permute.xlu1 %1143 }
  0xca   : > { %v1312_v5 = vsel %vm5304_vm1, %v872_v37, %v1144_v44 }
  0xcb   : > { %v1286_v45 = vpop.permute.xlu0 %1285 }
  0xcc   : > { %v1433_v15 = vsel %vm5206_vm0, %v1409_v36, %v1286_v45 }
  0xcd   : > { %v1174_v53 = vpop.permute.xlu1 %1173  ;;  %1695 = vmatprep.mubr.bf16.mxu0 %v1433_v15 }
  0xce   : > { %v1338_v56 = vsel %vm5207_vm7, %v1312_v5, %v1174_v53  ;;  %v875_v5 = vsel %vm4368_vm2, %v4236_v39, 0 }
  0xcf   : > { %v1236_v10 = vpop.permute.xlu0 %1235 }
  0xd0   : > { %v1391_v59 = vsel %vm5315_vm5, %v3998_v35, %v1236_v10  ;;  %vm5316_vm5 = vmmov %vm5304_vm1 }
  0xd1   : > { %v1204_v11 = vpop.permute.xlu1 %1203 }
  0xd2   : > { %v1363_v60 = vsel %vm5206_vm0, %v1338_v56, %v1204_v11 }
  0xd3   : > { %1696 = vmatmul.mubr.bf16.gmra.mxu0 %v1363_v60  ;;  %v1266_v52 = vpop.permute.xlu0 %1265 }
  0xd4   : > { %v1411_v14 = vsel %vm5207_vm7, %v1391_v59, %v1266_v52 }
  0xd5   : > { %v1146_v27 = vpop.permute.xlu1 %1145 }
  0xd6   : > { %v1315_v4 = vsel %vm5304_vm1, %v873_v40, %v1146_v27 }
  0xd7   : > { %v1288_v18 = vpop.permute.xlu0 %1287 }
  0xd8   : > { %v1436_v17 = vsel %vm5206_vm0, %v1411_v14, %v1288_v18 }
  0xd9   : > { %v1176_v38 = vpop.permute.xlu1 %1175  ;;  %1703 = vmatprep.mubr.bf16.mxu0 %v1436_v17 }
  0xda   : > { %v1340_v25 = vsel %vm5207_vm7, %v1315_v4, %v1176_v38 }
  0xdb   : > { %v1238_v57 = vpop.permute.xlu0 %1237 }
  0xdc   : > { %v1393_v29 = vsel %vm5316_vm5, %v4066_v22, %v1238_v57  ;;  %vm5317_vm5 = vmmov %vm5304_vm1 }
  0xdd   : > { %v1206_v9 = vpop.permute.xlu1 %1205 }
  0xde   : > { %v1366_v35 = vsel %vm5206_vm0, %v1340_v25, %v1206_v9 }
  0xdf   : > { %1704 = vmatmul.mubr.bf16.gmra.mxu0 %v1366_v35  ;;  %v1268_v32 = vpop.permute.xlu0 %1267 }
  0xe0   : > { %v1413_v63 = vsel %vm5207_vm7, %v1393_v29, %v1268_v32 }
  0xe1   : > { %v1148_v2 = vpop.permute.xlu1 %1147 }
  0xe2   : > { %v1318_v62 = vsel %vm5304_vm1, %v874_v54, %v1148_v2 }
  0xe3   : > { %v1290_v46 = vpop.permute.xlu0 %1289 }
  0xe4   : > { %v1439_v23 = vsel %vm5206_vm0, %v1413_v63, %v1290_v46 }
  0xe5   : > { %v1178_v16 = vpop.permute.xlu1 %1177  ;;  %1711 = vmatprep.mubr.bf16.mxu0 %v1439_v23 }
  0xe6   : > { %v1342_v44 = vsel %vm5207_vm7, %v1318_v62, %v1178_v16  ;;  %v4587_v16 = vld [vmem:[%s5172_s4 + $0x88] sm:$0xff]  }
  0xe7   : > { %v1240_v33 = vpop.permute.xlu0 %1239  ;;  %3329 = vmatprep.subr.bf16.mxu0 %v4587_v16 }
  0xe8   : > { %v1395_v37 = vsel %vm5317_vm5, %v4178_v31, %v1240_v33  ;;  %vm5318_vm5 = vmmov %vm5304_vm1  ;;  %3330 = vmatpush3.bf16.msra.mxu0 %v4587_v16  ;;  %v4602_v33 = vld [vmem:[%s5171_s3] ss:$0 sm:$0xff] }
  0xe9   : > { %v1208_v36 = vpop.permute.xlu1 %1207  ;;  %3331 = vmatprep.subr.bf16.mxu0 %v4594_v24 }
  0xea   : > { %v1369_v22 = vsel %vm5206_vm0, %v1342_v44, %v1208_v36 }
  0xeb   : > { %1712 = vmatmul.mubr.bf16.gmra.mxu0 %v1369_v22  ;;  %v1270_v45 = vpop.permute.xlu0 %1269 }
  0xec   : > { %v1415_v50 = vsel %vm5207_vm7, %v1395_v37, %v1270_v45  ;;  %3332 = vmatpush3.bf16.msra.mxu0 %v4594_v24  ;;  %v3453_v45 = vld [vmem:[%s5172_s4 + $0x78] sm:$0xff]  }
  0xed   : > { %v1150_v53 = vpop.permute.xlu1 %1149  ;;  %3231 = vmatprep.subr.bf16.mxu1 %v3453_v45 }
  0xee   : > { %v1321_v11 = vsel %vm5304_vm1, %v875_v5, %v1150_v53  ;;  %v3454_v53 = vld [vmem:[%s5172_s4 + $0x38] sm:$0xff]  }
  0xef   : > { %v1292_v15 = vpop.permute.xlu0 %1291  ;;  %3232 = vmatpush3.bf16.msra.mxu1 %v3454_v53 }
  0xf0   : > { %v1442_v56 = vsel %vm5206_vm0, %v1415_v50, %v1292_v15  ;;  %v3455_v15 = vld [vmem:[%s5172_s4 + $0x70] sm:$0xff]  }
  0xf1   : > { %v1180_v10 = vpop.permute.xlu1 %1179  ;;  %1719 = vmatprep.mubr.bf16.mxu0 %v1442_v56  ;;  %v3456_v56 = vld [vmem:[%s5172_s4 + $0x30] sm:$0xff]   ;;  %3233 = vmatprep.subr.bf16.mxu1 %v3455_v15 }
  0xf2   : > { %v1344_v52 = vsel %vm5207_vm7, %v1321_v11, %v1180_v10 }
  0xf3   : > { %v1242_v60 = vpop.permute.xlu0 %1241  ;;  %3234 = vmatpush3.bf16.msra.mxu1 %v3456_v56 }
  0xf4   : > { %v1397_v14 = vsel %vm5318_vm5, %v4284_v21, %v1242_v60  ;;  %vm5319_vm5 = vmmov %vm5304_vm1 }
  0xf5   : > { %v1210_v59 = vpop.permute.xlu1 %1209 }
  0xf6   : > { %v1372_v31 = vsel %vm5206_vm0, %v1344_v52, %v1210_v59  ;;  %v1899_v52 = vstv %s1898_s29  ;;  %s5117_s29 = scalar_lea.sflag [#allocation3], %s292_s18 }
  0xf7   : > { %1720 = vmatmul.mubr.bf16.gmra.mxu0 %v1372_v31  ;;  %v1272_v27 = vpop.permute.xlu0 %1271  ;;  %vm1900_vm3 = vcmp.eq.s32.totalorder %v1899_v52, 1 }
  0xf8   : > { %v1417_v39 = vsel %vm5207_vm7, %v1397_v14, %v1272_v27 }
  0xf9   : > { %v1152_v18 = vpop.permute.xlu1 %1151 }
  0xfa   : > { %v1324_v4 = vsel %vm5304_vm1, %v876_v34, %v1152_v18  ;;  %vm5321_vm1 = vsmask.f32 7424 }
  0xfb   : > { %v1294_v40 = vpop.permute.xlu0 %1293 }
  0xfc   : > { %v1445_v17 = vsel %vm5206_vm0, %v1417_v39, %v1294_v40  ;;  %v3457_v40 = vld [vmem:[%s5172_s4 + $0x68] sm:$0xff]  }
  0xfd   : > { %v1182_v38 = vpop.permute.xlu1 %1181  ;;  %1727 = vmatprep.mubr.bf16.mxu0 %v1445_v17  ;;  %v3459_v17 = vld [vmem:[%s5172_s4 + $0x60] sm:$0xff]   ;;  %3235 = vmatprep.subr.bf16.mxu1 %v3457_v40 }
  0xfe   : > { %v1346_v25 = vsel %vm5207_vm7, %v1324_v4, %v1182_v38  ;;  %v3458_v38 = vld [vmem:[%s5172_s4 + $0x28] sm:$0xff]  }
  0xff   : > { %v1244_v57 = vpop.permute.xlu0 %1243  ;;  %3236 = vmatpush3.bf16.msra.mxu1 %v3458_v38 }
 0x100   : > { %v1399_v32 = vsel %vm5319_vm5, %v4180_v6, %v1244_v57  ;;  %3237 = vmatprep.subr.bf16.mxu1 %v3459_v17  ;;  %vm5322_vm5 = vnez %v5229_v61 }
 0x101   : > { %v1212_v9 = vpop.permute.xlu1 %1211 }
 0x102   : > { %v1375_v21 = vsel %vm5206_vm0, %v1346_v25, %v1212_v9 }
 0x103   : > { %1728 = vmatmul.mubr.bf16.gmra.mxu0 %v1375_v21  ;;  %v1274_v35 = vpop.permute.xlu0 %1273 }
 0x104   : > { %v1419_v2 = vsel %vm5207_vm7, %v1399_v32, %v1274_v35 }
 0x105   : > { %v1154_v29 = vpop.permute.xlu1 %1153 }
 0x106   : > { %v1327_v34 = vsel %vm5320_vm9, %v877_v49, %v1154_v29  ;;  %vm5324_vm9 = vsmask.f32 256 }
 0x107   : > { %v1296_v63 = vpop.permute.xlu0 %1295 }
 0x108   : > { %v1448_v30 = vsel %vm5206_vm0, %v1419_v2, %v1296_v63  ;;  %v3460_v63 = vld [vmem:[%s5172_s4 + $0x20] sm:$0xff]  }
 0x109   : > { %v1184_v7 = vpop.permute.xlu1 %1183  ;;  %1735 = vmatprep.mubr.bf16.mxu0 %v1448_v30  ;;  %3238 = vmatpush3.bf16.msra.mxu1 %v3460_v63 }
 0x10a   : > { %v1348_v46 = vsel %vm5207_vm7, %v1327_v34, %v1184_v7  ;;  %v3461_v34 = vld [vmem:[%s5172_s4 + $0x58] sm:$0xff]   ;;  %vm5334_vm7 = vsmask.f32 256 }
 0x10b   : > { %3239 = vmatprep.subr.bf16.mxu1 %v3461_v34 }
 0x10d   : > { %v1214_v54 = vpop.permute.xlu1 %1213 }
 0x10e   : > { %v1378_v6 = vsel %vm5206_vm0, %v1348_v46, %v1214_v54  ;;  %vm5329_vm0 = vcmask 261120  }
 0x10f   : > { %1736 = vmatmul.mubr.bf16.gmra.mxu0 %v1378_v6 }
 0x119   : > { %v3311_v47 = vpop.f32.mrf.mxu1 }
 0x11b   : > { %v1778_v23 = vpop.f32.mrf.mxu1 }
 0x11d   : > { %v3312_v22 = vpop.f32.mrf.mxu1 }
 0x11f   : > { %v1781_v60 = vpop.f32.mrf.mxu1 }
 0x121   : > { %v4633_v30 = vpop.f32.mrf.mxu1 }
 0x167   : > { %v3159_v49 = vpop.f32.mrf.mxu0 }
 0x169   : > { %v3160_v62 = vpop.f32.mrf.mxu0 }
 0x16a   : > { %v3161_v44 = vadd.f32 %v3160_v62, %v3159_v49  ;;  %v3462_v62 = vld [vmem:[%s5172_s4 + $0x18] sm:$0xff]  }
 0x16b   : > { %v3162_v36 = vpop.f32.mrf.mxu0  ;;  %3240 = vmatpush3.bf16.msra.mxu1 %v3462_v62 }
 0x16c   : > { %v1666_v37 = vadd.f32 %v3161_v44, %v4602_v33 }
 0x16d   : > { %v3163_v50 = vpop.f32.mrf.mxu0 }
 0x16e   : > { %v3164_v5 = vadd.f32 %v3163_v50, %v3162_v36  ;;  %v1779_v10 = vadd.f32 %v1778_v23, %v1666_v37  ;;  %v1794_v36 = vpop.f32.mrf.mxu1 }
 0x16f   : > { %v3165_v11 = vpop.f32.mrf.mxu0 }
 0x170   : > { %v1669_v59 = vadd.f32 %v3164_v5, %v4602_v33  ;;  %v1857_v27 = vmax.f32 %v1779_v10, 0.0 }
 0x171   : > { %v3166_v31 = vpop.f32.mrf.mxu0 }
 0x172   : > { %v3167_v14 = vadd.f32 %v3166_v31, %v3165_v11  ;;  %v1782_v18 = vadd.f32 %v1781_v60, %v1669_v59  ;;  %v2025_v9 = vsel %vm1900_vm3, %v1857_v27, 0.0  ;;  %v3464_v11 = vld [vmem:[%s5172_s4 + $0x10] sm:$0xff]   ;;  %v3316_v60 = vpop.f32.mrf.mxu1  ;;  %v3465_v59 = vld [vmem:[%s5172_s4 + $0x48] sm:$0xff]  }
 0x173   : > { %v3168_v39 = vpop.f32.mrf.mxu0 }
 0x174   : > { %v1674_v4 = vadd.f32 %v3167_v14, %v4602_v33  ;;  %v1858_v57 = vmax.f32 %v1782_v18, 0.0 }
 0x175   : > { %v3169_v25 = vpop.f32.mrf.mxu0 }
 0x176   : > { %v2026_v21 = vsel %vm1900_vm3, %v1858_v57, 0.0  ;;  %v3170_v35 = vadd.f32 %v3169_v25, %v3168_v39  ;;  %v1787_v29 = vadd.f32 %v3311_v47, %v1674_v4  ;;  %v3466_v4 = vld [vmem:[%s5172_s4 + $0x8] sm:$0xff]   ;;  %v1797_v57 = vpop.f32.mrf.mxu1  ;;  %vm5326_vm3 = vmmov %vm5321_vm1 }
 0x177   : > { %v2045_v32 = vpack.c.bf16 %v2026_v21, %v2025_v9  ;;  %v3467_v9 = vld [vmem:[%s5172_s4 + $0x40] sm:$0xff]  }
 0x178   : > { %v1677_v2 = vadd.f32 %v3170_v35, %v4602_v33  ;;  %v1859_v49 = vmax.f32 %v1787_v29, 0.0 }
 0x179   : > { %2249 = vrot.lane.b32.xlu1 %v2045_v32, %s3565_s9  ;;  %v2056_v7 = vshrl.u32 %v2045_v32, 16  ;;  %v2059_v54 = vshll.u32 %v2045_v32, 16 }
 0x17a   : > { %v1790_v46 = vadd.f32 %v3312_v22, %v1677_v2  ;;  %v3463_v22 = vld [vmem:[%s5172_s4 + $0x50] sm:$0xff]  }
 0x17b   : > { %v3171_v6 = vpop.f32.mrf.mxu0  ;;  %v2058_v47 = vrot.slane %v2056_v7, 7  ;;  %v2135_v50 = vrot.slane %v2059_v54, 1  ;;  %3241 = vmatprep.subr.bf16.mxu1 %v3463_v22 }
 0x17c   : > { %v1860_v23 = vmax.f32 %v1790_v46, 0.0  ;;  %3242 = vmatpush3.bf16.msra.mxu1 %v3464_v11 }
 0x17d   : > { %v3172_v44 = vpop.f32.mrf.mxu0  ;;  %v4641_v45 = vor.u32 %v2059_v54, %v2058_v47  ;;  %v2136_v27 = vor.u32 %v2135_v50, %v2056_v7  ;;  %3243 = vmatprep.subr.bf16.mxu1 %v3465_v59  ;;  %v3468_v7 = vld [vmem:[%s5172_s4] sm:$0xff]  }
 0x17e   : > { %v4643_v37 = vpack.c.bf16 %v1860_v23, %v1859_v49  ;;  %v3173_v53 = vadd.f32 %v3172_v44, %v3171_v6 }
 0x17f   : > { %v3174_v15 = vpop.f32.mrf.mxu0 }
 0x180   : > { %v1682_v5 = vadd.f32 %v3173_v53, %v4602_v33  ;;  %2251 = vrot.lane.b32.xlu1 %v4643_v37, %s3565_s9  ;;  %v2066_v10 = vshll.u32 %v4643_v37, 16  ;;  %v2063_v56 = vshrl.u32 %v4643_v37, 16  ;;  %3244 = vmatpush3.bf16.msra.mxu1 %v3466_v4 }
 0x181   : > { %v3175_v52 = vpop.f32.mrf.mxu0  ;;  %3245 = vmatprep.subr.bf16.mxu1 %v3467_v9 }
 0x182   : > { %v3176_v31 = vadd.f32 %v3175_v52, %v3174_v15  ;;  %v2137_v14 = vrot.slane %v2066_v10, 1  ;;  %v2065_v18 = vrot.slane %v2063_v56, 7  ;;  %v1795_v39 = vadd.f32 %v1794_v36, %v1682_v5 }
 0x184   : > { %v1685_v40 = vadd.f32 %v3176_v31, %v4602_v33  ;;  %v2138_v38 = vsel %vm5321_vm1, %v2136_v27, %v2137_v14  ;;  %v2068_v17 = vor.u32 %v2066_v10, %v2065_v18  ;;  %v1861_v2 = vmax.f32 %v1795_v39, 0.0  ;;  %3246 = vmatpush3.bf16.msra.mxu1 %v3468_v7  ;;  %v4698_v31 = vpop.f32.mrf.mxu1 }
 0x185   : > { %v2167_v25 = vsel %vm5322_vm5, %v2138_v38, 0  ;;  %3349 = vmatprep.subr.bf16.mxu1 %v4587_v16  ;;  %v2139_v53 = vor.u32 %v2137_v14, %v2063_v56  ;;  %vm5327_vm1 = vnez %v5231_v12 }
 0x186   : > { %v1798_v21 = vadd.f32 %v1797_v57, %v1685_v40  ;;  %2273 = vrot.lane.b32.xlu1 %v2167_v25, %s5323_s30  ;;  %v2185_v35 = vsel %vm3779_vm12, 0, %v2068_v17  ;;  %v4673_v32 = vsel %vm5324_vm9, %v2058_v47, %v2068_v17  ;;  %v1810_v17 = vpop.f32.mrf.mxu1 }
 0x187   : > { %v3177_v29 = vpop.f32.mrf.mxu0  ;;  %v2186_v46 = vsel %vm3789_vm14, %v2185_v35, 0 }
 0x188   : > { %v1862_v63 = vmax.f32 %v1798_v21, 0.0 }
 0x189   : > { %v3178_v34 = vpop.f32.mrf.mxu0 }
 0x18a   : > { %v4680_v54 = vpack.c.bf16 %v1862_v63, %v1861_v2  ;;  %v3179_v6 = vadd.f32 %v3178_v34, %v3177_v29  ;;  %2297 = vrot.lane.b32.xlu1 %v2186_v46, %s5325_s14  ;;  %v3320_v29 = vpop.f32.mrf.mxu1 }
 0x18b   : > { %v3180_v47 = vpop.f32.mrf.mxu0 }
 0x18c   : > { %v1690_v49 = vadd.f32 %v3179_v6, %v4602_v33  ;;  %2363 = vrot.lane.b32.xlu0 %v4680_v54, %s5325_s14  ;;  %v2074_v23 = vshll.u32 %v4680_v54, 16  ;;  %v2071_v62 = vshrl.u32 %v4680_v54, 16 }
 0x18d   : > { %v3181_v44 = vpop.f32.mrf.mxu0 }
 0x18e   : > { %v3182_v36 = vadd.f32 %v3181_v44, %v3180_v47  ;;  %2253 = vrot.lane.b32.xlu1 %v4680_v54, %s3565_s9  ;;  %v2140_v50 = vrot.slane %v2074_v23, 1  ;;  %v2073_v22 = vrot.slane %v2071_v62, 7  ;;  %v1803_v15 = vadd.f32 %v4633_v30, %v1690_v49 }
 0x190   : > { %v1693_v5 = vadd.f32 %v3182_v36, %v4602_v33  ;;  %v2141_v10 = vsel %vm5326_vm3, %v2139_v53, %v2140_v50  ;;  %v2076_v11 = vor.u32 %v2074_v23, %v2073_v22  ;;  %v1863_v39 = vmax.f32 %v1803_v15, 0.0  ;;  %v1813_v23 = vpop.f32.mrf.mxu1 }
 0x191   : > { %v2200_v52 = vsel %vm5322_vm5, %v2141_v10, 0  ;;  %v2168_v59 = vsel %vm5327_vm1, %v2141_v10, 0  ;;  %v2142_v7 = vor.u32 %v2140_v50, %v2071_v62 }
 0x192   : > { %v1806_v27 = vadd.f32 %v3316_v60, %v1693_v5  ;;  %2321 = vrot.lane.b32.xlu0 %v2200_v52, %s3565_s9  ;;  %2275 = vrot.lane.b32.xlu1 %v2168_v59, %s5323_s30  ;;  %v2218_v30 = vsel %vm3779_vm12, 0, %v2076_v11  ;;  %v4705_v56 = vsel %vm5324_vm9, %v2065_v18, %v2076_v11  ;;  %vm5328_vm9 = vnez %v5241_v1 }
 0x193   : > { %v3183_v14 = vpop.f32.mrf.mxu0  ;;  %v2219_v4 = vsel %vm3789_vm14, %v2218_v30, 0  ;;  %v2187_v60 = vsel %vm3887_vm6, %v4705_v56, 0 }
 0x194   : > { %v1864_v40 = vmax.f32 %v1806_v27, 0.0 }
 0x195   : > { %v3184_v38 = vpop.f32.mrf.mxu0 }
 0x196   : > { %v4712_v57 = vpack.c.bf16 %v1864_v40, %v1863_v39  ;;  %v3185_v25 = vadd.f32 %v3184_v38, %v3183_v14  ;;  %2345 = vrot.lane.b32.xlu0 %v2219_v4, %s5323_s30  ;;  %2299 = vrot.lane.b32.xlu1 %v2187_v60, %s5325_s14 }
 0x197   : > { %v3186_v18 = vpop.f32.mrf.mxu0 }
 0x198   : > { %v1698_v9 = vadd.f32 %v3185_v25, %v4602_v33  ;;  %v2079_v21 = vshrl.u32 %v4712_v57, 16  ;;  %v2082_v35 = vshll.u32 %v4712_v57, 16 }
 0x199   : > { %v3187_v2 = vpop.f32.mrf.mxu0 }
 0x19a   : > { %v3188_v63 = vadd.f32 %v3187_v2, %v3186_v18  ;;  %2365 = vrot.lane.b32.xlu0 %v4712_v57, %s5325_s14  ;;  %2255 = vrot.lane.b32.xlu1 %v4712_v57, %s3565_s9  ;;  %v2143_v34 = vrot.slane %v2082_v35, 1  ;;  %v2081_v46 = vrot.slane %v2079_v21, 7  ;;  %v1811_v6 = vadd.f32 %v1810_v17, %v1698_v9 }
 0x19c   : > { %v1701_v47 = vadd.f32 %v3188_v63, %v4602_v33  ;;  %v2144_v49 = vsel %vm5326_vm3, %v2142_v7, %v2143_v34  ;;  %v2084_v15 = vor.u32 %v2082_v35, %v2081_v46  ;;  %vm5330_vm3 = vsmask.f32 256 }
 0x19d   : > { %v2233_v44 = vsel %vm5322_vm5, %v2144_v49, 0  ;;  %v2201_v36 = vsel %vm5327_vm1, %v2144_v49, 0  ;;  %v2169_v53 = vsel %vm5328_vm9, %v2144_v49, 0  ;;  %v1865_v61 = vmax.f32 %v1811_v6, 0.0 }
 0x19e   : > { %v1814_v5 = vadd.f32 %v1813_v23, %v1701_v47  ;;  %3333 = vmatprep.mubr.msk.bf16.mxu0 %vm5329_vm0, %v2233_v44  ;;  %2323 = vrot.lane.b32.xlu0 %v2201_v36, %s3565_s9  ;;  %v4735_v50 = vsel %vm5330_vm3, %v2073_v22, %v2084_v15  ;;  %v2145_v17 = vor.u32 %v2143_v34, %v2079_v21  ;;  %vm5331_vm0 = vsmask.f32 7424  ;;  %v4763_v34 = vpop.f32.mrf.mxu1 }
 0x19f   : > { %2277 = vrot.lane.b32.xlu1 %v2169_v53, %s5323_s30  ;;  %v3189_v62 = vpop.f32.mrf.mxu0  ;;  %v2220_v52 = vsel %vm3887_vm6, %v4735_v50, 0  ;;  %v2188_v30 = vsel %vm5311_vm4, %v4735_v50, 0  ;;  %vm5332_vm5 = vnez %v5247_v48  ;;  %vm5333_vm3 = vcmask 261120  }
 0x1a0   : > { %v1866_v10 = vmax.f32 %v1814_v5, 0.0  ;;  %v1826_v44 = vpop.f32.mrf.mxu1 }
 0x1a1   : > { %v3190_v11 = vpop.f32.mrf.mxu0 }
 0x1a2   : > { %v4740_v59 = vpack.c.bf16 %v1866_v10, %v1865_v61  ;;  %v3191_v27 = vadd.f32 %v3190_v11, %v3189_v62  ;;  %2347 = vrot.lane.b32.xlu0 %v2220_v52, %s5323_s30  ;;  %v3324_v10 = vpop.f32.mrf.mxu1 }
 0x1a3   : > { %2301 = vrot.lane.b32.xlu1 %v2188_v30, %s5325_s14  ;;  %v3192_v22 = vpop.f32.mrf.mxu0 }
 0x1a4   : > { %v2090_v14 = vshll.u32 %v4740_v59, 16  ;;  %v1706_v39 = vadd.f32 %v3191_v27, %v4602_v33  ;;  %v2087_v40 = vshrl.u32 %v4740_v59, 16 }
 0x1a5   : > { %v3193_v38 = vpop.f32.mrf.mxu0 }
 0x1a6   : > { %v3194_v4 = vadd.f32 %v3193_v38, %v3192_v22  ;;  %2367 = vrot.lane.b32.xlu0 %v4740_v59, %s5325_s14  ;;  %v2146_v60 = vrot.slane %v2090_v14, 1  ;;  %v2089_v25 = vrot.slane %v2087_v40, 7  ;;  %v1819_v18 = vadd.f32 %v4698_v31, %v1706_v39 }
 0x1a7   : > { %2257 = vrot.lane.b32.xlu1 %v4740_v59, %s3565_s9 }
 0x1a8   : > { %v1709_v9 = vadd.f32 %v3194_v4, %v4602_v33  ;;  %v2147_v35 = vsel %vm5331_vm0, %v2145_v17, %v2146_v60  ;;  %v2092_v2 = vor.u32 %v2090_v14, %v2089_v25  ;;  %v1867_v47 = vmax.f32 %v1819_v18, 0.0  ;;  %v1829_v4 = vpop.f32.mrf.mxu1 }
 0x1a9   : > { %v2234_v63 = vsel %vm5327_vm1, %v2147_v35, 0  ;;  %v2202_v21 = vsel %vm5328_vm9, %v2147_v35, 0  ;;  %v2170_v7 = vsel %vm5332_vm5, %v2147_v35, 0  ;;  %v2148_v27 = vor.u32 %v2146_v60, %v2087_v40 }
 0x1aa   : > { %v1822_v6 = vadd.f32 %v3320_v29, %v1709_v9  ;;  %3334 = vmatmul.mubr.msk.bf16.vlgmr.msra.gmra.mxu0 %vm5333_vm3, %v2234_v63  ;;  %2325 = vrot.lane.b32.xlu0 %v2202_v21, %s3565_s9  ;;  %v4768_v31 = vsel %vm5334_vm7, %v2081_v46, %v2092_v2  ;;  %vm5335_vm7 = vmmov %vm5331_vm0  ;;  %vm5336_vm1 = vnez %v5255_v28 }
 0x1ab   : > { %2279 = vrot.lane.b32.xlu1 %v2170_v7, %s5323_s30  ;;  %v3195_v12 = vpop.f32.mrf.mxu0  ;;  %v2221_v36 = vsel %vm5311_vm4, %v4768_v31, 0  ;;  %v2189_v46 = vsel %vm5313_vm8, %v4768_v31, 0  ;;  %vm5337_vm0 = vmmov %vm5333_vm3  ;;  %vm5338_vm3 = vsmask.f32 256 }
 0x1ac   : > { %v1868_v49 = vmax.f32 %v1822_v6, 0.0 }
 0x1ad   : > { %v3196_v23 = vpop.f32.mrf.mxu0 }
 0x1ae   : > { %v4774_v53 = vpack.c.bf16 %v1868_v49, %v1867_v47  ;;  %v3197_v29 = vadd.f32 %v3196_v23, %v3195_v12  ;;  %2349 = vrot.lane.b32.xlu0 %v2221_v36, %s5323_s30 }
 0x1af   : > { %2303 = vrot.lane.b32.xlu1 %v2189_v46, %s5325_s14  ;;  %v3198_v15 = vpop.f32.mrf.mxu0 }
 0x1b0   : > { %v1714_v5 = vadd.f32 %v3197_v29, %v4602_v33  ;;  %v2098_v62 = vshll.u32 %v4774_v53, 16  ;;  %v2095_v61 = vshrl.u32 %v4774_v53, 16 }
 0x1b1   : > { %v3199_v11 = vpop.f32.mrf.mxu0 }
 0x1b2   : > { %v3200_v52 = vadd.f32 %v3199_v11, %v3198_v15  ;;  %2369 = vrot.lane.b32.xlu0 %v4774_v53, %s5325_s14  ;;  %v2149_v30 = vrot.slane %v2098_v62, 1  ;;  %v2097_v22 = vrot.slane %v2095_v61, 7  ;;  %v1827_v14 = vadd.f32 %v1826_v44, %v1714_v5 }
 0x1b3   : > { %2259 = vrot.lane.b32.xlu1 %v4774_v53, %s3565_s9 }
 0x1b4   : > { %v1717_v39 = vadd.f32 %v3200_v52, %v4602_v33  ;;  %v2150_v38 = vsel %vm5335_vm7, %v2148_v27, %v2149_v30  ;;  %v2100_v17 = vor.u32 %v2098_v62, %v2097_v22  ;;  %v1869_v63 = vmax.f32 %v1827_v14, 0.0 }
 0x1b5   : > { %v2235_v18 = vsel %vm5328_vm9, %v2150_v38, 0  ;;  %v2203_v9 = vsel %vm5332_vm5, %v2150_v38, 0  ;;  %v2171_v40 = vsel %vm5336_vm1, %v2150_v38, 0  ;;  %v2151_v46 = vor.u32 %v2149_v30, %v2095_v61  ;;  %vm5339_vm9 = vmmov %vm5335_vm7  ;;  %v3327_v30 = vpop.f32.mrf.mxu1 }
 0x1b6   : > { %v1830_v60 = vadd.f32 %v1829_v4, %v1717_v39  ;;  %3337 = vmatprep.mubr.msk.bf16.mxu0 %vm5337_vm0, %v2235_v18  ;;  %2327 = vrot.lane.b32.xlu0 %v2203_v9, %s3565_s9  ;;  %v4799_v35 = vsel %vm5338_vm3, %v2089_v25, %v2100_v17  ;;  %vm5340_vm7 = vnez %v5262_v58 }
 0x1b7   : > { %2281 = vrot.lane.b32.xlu1 %v2171_v40, %s5323_s30  ;;  %v3201_v2 = vpop.f32.mrf.mxu0  ;;  %v2222_v7 = vsel %vm5313_vm8, %v4799_v35, 0  ;;  %v2190_v25 = vsel %vm4125_vm13, %v4799_v35, 0  ;;  %v1842_v9 = vpop.f32.mrf.mxu1 }
 0x1b8   : > { %v1870_v1 = vmax.f32 %v1830_v60, 0.0 }
 0x1b9   : > { %v3202_v21 = vpop.f32.mrf.mxu0 }
 0x1ba   : > { %v4805_v6 = vpack.c.bf16 %v1870_v1, %v1869_v63  ;;  %v3203_v12 = vadd.f32 %v3202_v21, %v3201_v2  ;;  %2351 = vrot.lane.b32.xlu0 %v2222_v7, %s5323_s30  ;;  %v3328_v7 = vpop.f32.mrf.mxu1 }
 0x1bb   : > { %2305 = vrot.lane.b32.xlu1 %v2190_v25, %s5325_s14  ;;  %v3204_v47 = vpop.f32.mrf.mxu0 }
 0x1bc   : > { %v1722_v49 = vadd.f32 %v3203_v12, %v4602_v33  ;;  %v2106_v23 = vshll.u32 %v4805_v6, 16  ;;  %v2103_v44 = vshrl.u32 %v4805_v6, 16 }
 0x1bd   : > { %v3205_v36 = vpop.f32.mrf.mxu0 }
 0x1be   : > { %v3206_v29 = vadd.f32 %v3205_v36, %v3204_v47  ;;  %2371 = vrot.lane.b32.xlu0 %v4805_v6, %s5325_s14  ;;  %v2152_v15 = vrot.slane %v2106_v23, 1  ;;  %v2105_v5 = vrot.slane %v2103_v44, 7  ;;  %v1835_v62 = vadd.f32 %v4763_v34, %v1722_v49 }
 0x1bf   : > { %2261 = vrot.lane.b32.xlu1 %v4805_v6, %s3565_s9 }
 0x1c0   : > { %v1725_v11 = vadd.f32 %v3206_v29, %v4602_v33  ;;  %v2153_v52 = vsel %vm5339_vm9, %v2151_v46, %v2152_v15  ;;  %v2108_v27 = vor.u32 %v2106_v23, %v2105_v5  ;;  %v1871_v48 = vmax.f32 %v1835_v62, 0.0 }
 0x1c1   : > { %v2236_v14 = vsel %vm5332_vm5, %v2153_v52, 0  ;;  %v2204_v39 = vsel %vm5336_vm1, %v2153_v52, 0  ;;  %v2172_v61 = vsel %vm5340_vm7, %v2153_v52, 0  ;;  %v2154_v47 = vor.u32 %v2152_v15, %v2103_v44  ;;  %vm5341_vm5 = vmmov %vm5339_vm9 }
 0x1c2   : > { %v1838_v38 = vadd.f32 %v3324_v10, %v1725_v11  ;;  %3338 = vmatmul.mubr.msk.bf16.gmra.mxu0 %vm5337_vm0, %v2236_v14  ;;  %2329 = vrot.lane.b32.xlu0 %v2204_v39, %s3565_s9  ;;  %v4831_v34 = vsel %vm5338_vm3, %v2097_v22, %v2108_v27  ;;  %v1845_v11 = vpop.f32.mrf.mxu1  ;;  %vm5342_vm9 = vnez %v5275_v26  ;;  %vm5343_vm0 = vmmov %vm5338_vm3  ;;  %vm5344_vm3 = vnez %v5282_v20 }
 0x1c3   : > { %2283 = vrot.lane.b32.xlu1 %v2172_v61, %s5323_s30  ;;  %v3207_v17 = vpop.f32.mrf.mxu0  ;;  %v2223_v40 = vsel %vm4125_vm13, %v4831_v34, 0  ;;  %v2191_v22 = vsel %vm4245_vm11, %v4831_v34, 0 }
 0x1c4   : > { %v1872_v4 = vmax.f32 %v1838_v38, 0.0 }
 0x1c5   : > { %v3208_v18 = vpop.f32.mrf.mxu0 }
 0x1c6   : > { %v4837_v60 = vpack.c.bf16 %v1872_v4, %v1871_v48  ;;  %v3209_v10 = vadd.f32 %v3208_v18, %v3207_v17  ;;  %2353 = vrot.lane.b32.xlu0 %v2223_v40, %s5323_s30 }
 0x1c7   : > { %2307 = vrot.lane.b32.xlu1 %v2191_v22, %s5325_s14  ;;  %v3210_v2 = vpop.f32.mrf.mxu0 }
 0x1c8   : > { %v1730_v63 = vadd.f32 %v3209_v10, %v4602_v33  ;;  %v2114_v1 = vshll.u32 %v4837_v60, 16  ;;  %v2111_v21 = vshrl.u32 %v4837_v60, 16 }
 0x1c9   : > { %v3211_v12 = vpop.f32.mrf.mxu0 }
 0x1ca   : > { %v3212_v25 = vadd.f32 %v3211_v12, %v3210_v2  ;;  %2373 = vrot.lane.b32.xlu0 %v4837_v60, %s5325_s14  ;;  %v2155_v49 = vrot.slane %v2114_v1, 1  ;;  %v2113_v23 = vrot.slane %v2111_v21, 7  ;;  %v1843_v36 = vadd.f32 %v1842_v9, %v1730_v63 }
 0x1cb   : > { %2263 = vrot.lane.b32.xlu1 %v4837_v60, %s3565_s9 }
 0x1cc   : > { %v1733_v29 = vadd.f32 %v3212_v25, %v4602_v33  ;;  %v4853_v46 = vsel %vm5341_vm5, %v2154_v47, %v2155_v49  ;;  %v2116_v62 = vor.u32 %v2114_v1, %v2113_v23  ;;  %v2157_v14 = vor.u32 %v2155_v49, %v2111_v21 }
 0x1cd   : > { %v2205_v52 = vsel %vm5340_vm7, %v4853_v46, 0  ;;  %v2173_v44 = vsel %vm5342_vm9, %v4853_v46, 0  ;;  %v1873_v61 = vmax.f32 %v1843_v36, 0.0  ;;  %v1943_v49 = vstv %s1942_s16  ;;  %s3056_s16 = sshll.u32 %s292_s18, 7 }
 0x1ce   : > { %v1846_v15 = vadd.f32 %v1845_v11, %v1733_v29  ;;  %2331 = vrot.lane.b32.xlu0 %v2205_v52, %s3565_s9  ;;  %v4863_v27 = vsel %vm5343_vm0, %v2105_v5, %v2116_v62  ;;  %v2166_v9 = vsel %vm4419_vm10, %v2157_v14, 0  ;;  %vm1944_vm7 = vcmp.eq.s32.totalorder %v1943_v49, 1 }
 0x1cf   : > { %2285 = vrot.lane.b32.xlu1 %v2173_v44, %s5323_s30  ;;  %v3213_v39 = vpop.f32.mrf.mxu0  ;;  %v2224_v48 = vsel %vm4245_vm11, %v4863_v27, 0  ;;  %v2192_v5 = vsel %vm4321_vm15, %v4863_v27, 0  ;;  %v2174_v1 = vsel %vm5344_vm3, %v2166_v9, 0  ;;  %v2237_v43 = vsel %vm5336_vm1, %v4853_v46, 0 }
 0x1d0   : > { %v1874_v38 = vmax.f32 %v1846_v15, 0.0  ;;  %vm5397_vm1 = vnez %v5282_v20  ;;  %v5029_v20 = vld [vmem:[%s5173_s5] ss:$0 sm:$0xff] }
 0x1d1   : > { %v3214_v17 = vpop.f32.mrf.mxu0 }
 0x1d2   : > { %v4870_v4 = vpack.c.bf16 %v1874_v38, %v1873_v61  ;;  %v3215_v18 = vadd.f32 %v3214_v17, %v3213_v39  ;;  %2355 = vrot.lane.b32.xlu0 %v2224_v48, %s5323_s30 }
 0x1d3   : > { %2309 = vrot.lane.b32.xlu1 %v2192_v5, %s5325_s14  ;;  %v3216_v40 = vpop.f32.mrf.mxu0 }
 0x1d4   : > { %v2176_v10 = vshrl.u32 %v4870_v4, 16  ;;  %v1738_v22 = vadd.f32 %v3215_v18, %v4602_v33  ;;  %v2179_v2 = vshll.u32 %v4870_v4, 16 }
 0x1d5   : > { %v3217_v63 = vpop.f32.mrf.mxu0 }
 0x1d6   : > { %v1851_v21 = vadd.f32 %v3327_v30, %v1738_v22  ;;  %v3218_v12 = vadd.f32 %v3217_v63, %v3216_v40  ;;  %2375 = vrot.lane.b32.xlu0 %v4870_v4, %s5325_s14  ;;  %v2194_v25 = vrot.slane %v2179_v2, 1  ;;  %v2178_v47 = vrot.slane %v2176_v10, 7 }
 0x1d7   : > { %2287 = vrot.lane.b32.xlu1 %v2174_v1, %s5323_s30 }
 0x1d8   : > { %v1741_v36 = vadd.f32 %v3218_v12, %v4602_v33  ;;  %v4889_v29 = vsel %vm5341_vm5, %v2157_v14, %v2194_v25  ;;  %v2181_v62 = vor.u32 %v2179_v2, %v2178_v47  ;;  %v1875_v30 = vmax.f32 %v1851_v21, 0.0 }
 0x1d9   : > { %v2206_v11 = vsel %vm5342_vm9, %v4889_v29, 0  ;;  %v2196_v15 = vor.u32 %v2194_v25, %v2176_v10 }
 0x1da   : > { %v1854_v52 = vadd.f32 %v3328_v7, %v1741_v36  ;;  %2333 = vrot.lane.b32.xlu0 %v2206_v11, %s3565_s9  ;;  %v2182_v44 = vsel %vm5343_vm0, %v2113_v23, %v2181_v62  ;;  %v2043_v61 = vsel %vm1944_vm7, %v1875_v30, 0.0  ;;  %v2126_v30 = vsel %vm3779_vm12, 0, %v4641_v45 }
 0x1db   : > { %v2193_v39 = vsel %vm4368_vm2, %v2182_v44, 0  ;;  %v2225_v14 = vsel %vm4321_vm15, %v2182_v44, 0  ;;  %v2199_v7 = vsel %vm4419_vm10, %v2196_v15, 0  ;;  %vm5350_vm10 = vcmask 785408  }
 0x1dc   : > { %v1876_v33 = vmax.f32 %v1854_v52, 0.0  ;;  %2311 = vrot.lane.b32.xlu1 %v2193_v39, %s5325_s14  ;;  %v2207_v48 = vsel %vm5344_vm3, %v2199_v7, 0  ;;  %vm5351_vm9 = vmmov %vm5350_vm10  ;;  %v2128_v7 = vsel %vm3887_vm6, %v4673_v32, 0 }
 0x1de   : > { %v2044_v38 = vsel %vm1944_vm7, %v1876_v33, 0.0  ;;  %2357 = vrot.lane.b32.xlu0 %v2225_v14, %s5323_s30  ;;  %vm5345_vm7 = vmmov %vm5343_vm0  ;;  %vm5346_vm0 = vcmask 261120  }
 0x1df   : > { %v2054_v17 = vpack.c.bf16 %v2044_v38, %v2043_v61  ;;  %vm5352_vm12 = vmmov %vm5346_vm0 }
 0x1e1   : > { %v2209_v23 = vshrl.u32 %v2054_v17, 16  ;;  %v2212_v18 = vshll.u32 %v2054_v17, 16 }
 0x1e2   : > { %2335 = vrot.lane.b32.xlu0 %v2207_v48, %s3565_s9  ;;  %s5021_s9 = sshll.u32 %s3545_s24, 4 }
 0x1e3   : > { %v2211_v5 = vrot.slane %v2209_v23, 7  ;;  %v2227_v9 = vrot.slane %v2212_v18, 1  ;;  %p307_p2 = scmp.lt.s32.totalorder %s5021_s9, 31 }
 0x1e5   : > { %v2214_v40 = vor.u32 %v2212_v18, %v2211_v5  ;;  %v4908_v10 = vsel %vm5341_vm5, %v2196_v15, %v2227_v9  ;;  %v4910_v22 = vor.u32 %v2227_v9, %v2209_v23  ;;  %vm5347_vm5 = vmmov %vm5346_vm0  ;;  %s308_s12 = scalar_select %p307_p2, %s5021_s9, 31 }
 0x1e6   : > { %vm5358_vm6 = vmmov %vm5347_vm5 }
 0x1e7   : > { %v2215_v2 = vsel %vm5345_vm7, %v2178_v47, %v2214_v40  ;;  %v2127_v47 = vsel %vm3789_vm14, %v2126_v30, 0  ;;  %vm5348_vm7 = vcmask 523264   ;;  %vm5353_vm14 = vmmov %vm5346_vm0  ;;  %s310_s20 = sadd.s32 %s3059_s17, %s308_s12  ;;  %s5043_s12 = scalar_lea.vmem [#allocation2], %s3056_s16 }
 0x1e8   : > { %v2226_v63 = vsel %vm4368_vm2, %v2215_v2, 0  ;;  %vm5349_vm3 = vmmov %vm5348_vm7  ;;  %s3060_s19 = sshll.u32 %s310_s20, 3  ;;  %s3139_s17 = sshll.u32 %s3549_s25, 5 }
 0x1e9   : > { %2359 = vrot.lane.b32.xlu0 %v2226_v63, %s5323_s30  ;;  %s2945_s20 = sadd.s32 %s3139_s17, %s5021_s9  ;;  %s2948_s9 = sshll.u32 %s5043_s12, 4  ;;  %s5111_s9 = int_to_ptr.vmem [resolvable:$true] %s2948_s9 }
 0x1ea   : > { %s3140_s25 = sshll.u32 %s2945_s20, 7  ;;  %s3469_s24 = scalar_lea.vmem %s5111_s9, 2048 }
 0x1eb   : > { %v2250_v1 = vpop.permute.xlu1 %2249  ;;  %s5105_s13 = scalar_lea.hbm %s5174_s6, %s3140_s25  ;;  %p3470_p4 = scmp.ne.s32.totalorder %s5111_s9, %s3469_s24 }
 0x1ec   : > { %v2381_v39 = vsel %vm5347_vm5, %v2127_v47, %v2250_v1 }
 0x1ed   : > { %2377 = vrot.lane.b32.xlu0 %v2054_v17, %s5325_s14  ;;  %s5034_s14 = scalar_lea.vmem %s5169_s1, %s3060_s19  ;;  %p3471_p5 = pnand %p3470_p4, %p3657_p3 }
 0x1ef   : > { %p3472_p6 = pneg %p3471_p5 }
 0x1f2   : > { %v2252_v21 = vpop.permute.xlu1 %2251 }
 0x1f3   : > { %v2384_v48 = vsel %vm5353_vm14, %v2128_v7, %v2252_v21 }
 0x1f8   : > { %v2274_v12 = vpop.permute.xlu1 %2273 }
 0x1f9   : > { %v2404_v14 = vsel %vm5349_vm3, %v2381_v39, %v2274_v12 }
 0x1fc   : > { %v2298_v25 = vpop.permute.xlu1 %2297 }
 0x1fd   : > { %v2420_v38 = vsel %vm5351_vm9, %v2404_v14, %v2298_v25  ;;  %vm5355_vm9 = vmmov %vm5349_vm3 }
 0x1fe   : > { %v2364_v49 = vpop.permute.xlu0 %2363 }
 0x200   : > { %v2254_v36 = vpop.permute.xlu1 %2253 }
 0x204   : > { %v2322_v62 = vpop.permute.xlu0 %2321  ;;  %v2276_v11 = vpop.permute.xlu1 %2275 }
 0x205   : > { %v2444_v52 = vsel %vm5346_vm0, %v4643_v37, %v2322_v62 }
 0x208   : > { %v2346_v44 = vpop.permute.xlu0 %2345  ;;  %v2300_v15 = vpop.permute.xlu1 %2299 }
 0x209   : > { %v2460_v33 = vsel %vm5348_vm7, %v2444_v52, %v2346_v44 }
 0x20a   : > { %v2476_v61 = vsel %vm5350_vm10, %v2460_v33, %v2364_v49  ;;  %vm5354_vm10 = vmmov %vm5349_vm3  ;;  %vm5356_vm3 = vcmask 785408  }
 0x20b   : > { %2706 = vmatprep.mubr.bf16.mxu1 %v2476_v61  ;;  %vm5357_vm0 = vmmov %vm5356_vm3 }
 0x20c   : > { %v2366_v51 = vpop.permute.xlu0 %2365  ;;  %v2256_v45 = vpop.permute.xlu1 %2255  ;;  %2707 = vmatmul.mubr.bf16.vlgmr.msra.gmra.mxu1 %v2420_v38  ;;  %vm5360_vm14 = vmmov %vm5357_vm0 }
 0x20d   : > { %3351 = vmatpush3.bf16.msra.mxu1 %v4587_v16  ;;  %v2406_v16 = vsel %vm5355_vm9, %v2384_v48, %v2276_v11 }
 0x20e   : > { %3350 = vmatprep.subr.bf16.mxu1 %v4594_v24 }
 0x210   : > { %v2324_v55 = vpop.permute.xlu0 %2323 }
 0x211   : > { %v2278_v37 = vpop.permute.xlu1 %2277  ;;  %3352 = vmatpush3.bf16.msra.mxu1 %v4594_v24  ;;  %v2446_v17 = vsel %vm5352_vm12, %v4680_v54, %v2324_v55  ;;  %v2423_v24 = vsel %vm5357_vm0, %v2406_v16, %v2300_v15  ;;  %v2129_v54 = vsel %vm5311_vm4, %v4705_v56, 0  ;;  %vm5359_vm12 = vmmov %vm5348_vm7 }
 0x212   : > { %v2387_v21 = vsel %vm5347_vm5, %v2129_v54, %v2254_v36  ;;  %vm5362_vm4 = vmmov %vm5347_vm5 }
 0x213   : > { %v2408_v49 = vsel %vm5359_vm12, %v2387_v21, %v2278_v37  ;;  %vm5363_vm9 = vmmov %vm5362_vm4 }
 0x214   : > { %v2348_v23 = vpop.permute.xlu0 %2347 }
 0x215   : > { %v2462_v18 = vsel %vm5354_vm10, %v2446_v17, %v2348_v23  ;;  %v2302_v5 = vpop.permute.xlu1 %2301  ;;  %vm5361_vm10 = vmmov %vm5357_vm0 }
 0x216   : > { %v2479_v9 = vsel %vm5356_vm3, %v2462_v18, %v2366_v51  ;;  %v2426_v11 = vsel %vm5361_vm10, %v2408_v49, %v2302_v5  ;;  %vm5364_vm3 = vmmov %vm5348_vm7 }
 0x217   : > { %2714 = vmatprep.mubr.bf16.mxu1 %v2479_v9  ;;  %vm5365_vm0 = vmmov %vm5364_vm3 }
 0x218   : > { %v2368_v40 = vpop.permute.xlu0 %2367  ;;  %2715 = vmatmul.mubr.bf16.gmra.mxu1 %v2423_v24  ;;  %vm5370_vm12 = vmmov %vm5365_vm0 }
 0x219   : > { %v2258_v42 = vpop.permute.xlu1 %2257 }
 0x21c   : > { %v2326_v32 = vpop.permute.xlu0 %2325 }
 0x21d   : > { %v2280_v2 = vpop.permute.xlu1 %2279  ;;  %v2448_v63 = vsel %vm5358_vm6, %v4712_v57, %v2326_v32  ;;  %v2130_v57 = vsel %vm5313_vm8, %v4735_v50, 0  ;;  %vm5366_vm6 = vmmov %vm5361_vm10 }
 0x21e   : > { %v2390_v44 = vsel %vm5363_vm9, %v2130_v57, %v2256_v45  ;;  %vm5367_vm5 = vmmov %vm5366_vm6 }
 0x21f   : > { %v2410_v33 = vsel %vm5365_vm0, %v2390_v44, %v2280_v2  ;;  %vm5368_vm8 = vmmov %vm5362_vm4 }
 0x220   : > { %v2350_v1 = vpop.permute.xlu0 %2349  ;;  %vm5372_vm10 = vmmov %vm5367_vm5 }
 0x221   : > { %v2464_v12 = vsel %vm5348_vm7, %v2448_v63, %v2350_v1  ;;  %v2304_v25 = vpop.permute.xlu1 %2303  ;;  %vm5369_vm7 = vmmov %vm5362_vm4 }
 0x222   : > { %v2482_v62 = vsel %vm5360_vm14, %v2464_v12, %v2368_v40  ;;  %v2429_v61 = vsel %vm5367_vm5, %v2410_v33, %v2304_v25  ;;  %vm5371_vm14 = vmmov %vm5365_vm0 }
 0x223   : > { %2722 = vmatprep.mubr.bf16.mxu1 %v2482_v62  ;;  %vm5375_vm9 = vmmov %vm5369_vm7 }
 0x224   : > { %v2370_v30 = vpop.permute.xlu0 %2369  ;;  %2723 = vmatmul.mubr.bf16.gmra.mxu1 %v2426_v11 }
 0x225   : > { %v2260_v13 = vpop.permute.xlu1 %2259 }
 0x228   : > { %v2328_v56 = vpop.permute.xlu0 %2327 }
 0x229   : > { %v2282_v47 = vpop.permute.xlu1 %2281  ;;  %v2450_v36 = vsel %vm5362_vm4, %v4740_v59, %v2328_v56  ;;  %v2131_v59 = vsel %vm4125_vm13, %v4768_v31, 0  ;;  %vm5373_vm4 = vmmov %vm5367_vm5 }
 0x22a   : > { %v2393_v37 = vsel %vm5369_vm7, %v2131_v59, %v2258_v42  ;;  %vm5374_vm13 = vmmov %vm5369_vm7 }
 0x22b   : > { %v2412_v17 = vsel %vm5371_vm14, %v2393_v37, %v2282_v47  ;;  %vm5378_vm5 = vmmov %vm5373_vm4 }
 0x22c   : > { %v2352_v52 = vpop.permute.xlu0 %2351  ;;  %vm5383_vm14 = vmmov %vm5373_vm4 }
 0x22d   : > { %v2466_v15 = vsel %vm5364_vm3, %v2450_v36, %v2352_v52  ;;  %v2306_v39 = vpop.permute.xlu1 %2305  ;;  %vm5376_vm3 = vmmov %vm5365_vm0 }
 0x22e   : > { %v2485_v14 = vsel %vm5366_vm6, %v2466_v15, %v2370_v30  ;;  %v2432_v48 = vsel %vm5373_vm4, %v2412_v17, %v2306_v39  ;;  %vm5377_vm6 = vmmov %vm5373_vm4 }
 0x22f   : > { %2730 = vmatprep.mubr.bf16.mxu1 %v2485_v14  ;;  %v2868_v14 = vld [vmem:[%s5034_s14] sm:$0xff] }
 0x230   : > { %v2372_v38 = vpop.permute.xlu0 %2371  ;;  %2731 = vmatmul.mubr.bf16.gmra.mxu1 %v2429_v61 }
 0x231   : > { %v2262_v3 = vpop.permute.xlu1 %2261 }
 0x234   : > { %v2330_v50 = vpop.permute.xlu0 %2329 }
 0x235   : > { %v2452_v51 = vsel %vm5368_vm8, %v4774_v53, %v2330_v50  ;;  %v2284_v45 = vpop.permute.xlu1 %2283  ;;  %v2132_v53 = vsel %vm4245_vm11, %v4799_v35, 0  ;;  %vm5379_vm11 = vmmov %vm5369_vm7 }
 0x236   : > { %v2396_v24 = vsel %vm5375_vm9, %v2132_v53, %v2260_v13  ;;  %vm5380_vm8 = vmmov %vm5369_vm7  ;;  %v2870_v53 = vld [vmem:[%s5034_s14 + $0x10] sm:$0xff] }
 0x237   : > { %v2414_v42 = vsel %vm5365_vm0, %v2396_v24, %v2284_v45  ;;  %vm5381_vm7 = vmmov %vm5365_vm0  ;;  %v2869_v45 = vld [vmem:[%s5034_s14 + $0x8] sm:$0xff] }
 0x238   : > { %v2354_v55 = vpop.permute.xlu0 %2353  ;;  %vm5388_vm9 = vmmov %vm5365_vm0 }
 0x239   : > { %v2468_v7 = vsel %vm5370_vm12, %v2452_v51, %v2354_v55  ;;  %v2308_v8 = vpop.permute.xlu1 %2307  ;;  %vm5382_vm12 = vmmov %vm5365_vm0 }
 0x23a   : > { %v2488_v23 = vsel %vm5372_vm10, %v2468_v7, %v2372_v38  ;;  %v2435_v2 = vsel %vm5378_vm5, %v2414_v42, %v2308_v8  ;;  %vm5384_vm10 = vmmov %vm5373_vm4 }
 0x23b   : > { %2738 = vmatprep.mubr.bf16.mxu1 %v2488_v23  ;;  %vm5386_vm4 = vmmov %vm5380_vm8 }
 0x23c   : > { %v2374_v18 = vpop.permute.xlu0 %2373  ;;  %2739 = vmatmul.mubr.bf16.gmra.mxu1 %v2432_v48 }
 0x23d   : > { %v2264_v5 = vpop.permute.xlu1 %2263 }
 0x240   : > { %v2332_v31 = vpop.permute.xlu0 %2331 }
 0x241   : > { %v2454_v16 = vsel %vm5374_vm13, %v4805_v6, %v2332_v31  ;;  %v2286_v19 = vpop.permute.xlu1 %2285  ;;  %v2133_v6 = vsel %vm4321_vm15, %v4831_v34, 0  ;;  %vm5385_vm15 = vmmov %vm5380_vm8 }
 0x242   : > { %v2399_v12 = vsel %vm5380_vm8, %v2133_v6, %v2262_v3  ;;  %vm5387_vm13 = vmmov %vm5365_vm0 }
 0x243   : > { %v2416_v49 = vsel %vm5382_vm12, %v2399_v12, %v2286_v19 }
 0x244   : > { %v2356_v9 = vpop.permute.xlu0 %2355 }
 0x245   : > { %v2470_v40 = vsel %vm5376_vm3, %v2454_v16, %v2356_v9  ;;  %v2310_v63 = vpop.permute.xlu1 %2309  ;;  %vm5389_vm3 = vmmov %vm5378_vm5 }
 0x246   : > { %v2491_v32 = vsel %vm5377_vm6, %v2470_v40, %v2374_v18  ;;  %v2438_v11 = vsel %vm5384_vm10, %v2416_v49, %v2310_v63  ;;  %vm5390_vm0 = vmmov %vm5389_vm3  ;;  %vm5392_vm6 = vnez %v5262_v58 }
 0x247   : > { %2746 = vmatprep.mubr.bf16.mxu1 %v2491_v32  ;;  %v2871_v32 = vld [vmem:[%s5034_s14 + $0x18] sm:$0xff] }
 0x248   : > { %v2376_v54 = vpop.permute.xlu0 %2375  ;;  %2747 = vmatmul.mubr.bf16.gmra.mxu1 %v2435_v2 }
 0x249   : > { %v2288_v0 = vpop.permute.xlu1 %2287 }
 0x24c   : > { %v2334_v35 = vpop.permute.xlu0 %2333 }
 0x24d   : > { %v2456_v1 = vsel %vm5379_vm11, %v4837_v60, %v2334_v35  ;;  %v2134_v60 = vsel %vm4368_vm2, %v4863_v27, 0  ;;  %vm5391_vm2 = vmmov %vm5386_vm4  ;;  %v2238_v27 = vsel %vm5392_vm6, %v4889_v29, 0  ;;  %vm5394_vm11 = vnez %v5275_v26 }
 0x24e   : > { %v2312_v13 = vpop.permute.xlu1 %2311  ;;  %v2402_v47 = vsel %vm5386_vm4, %v2134_v60, %v2264_v5  ;;  %vm5393_vm5 = vmmov %vm5391_vm2 }
 0x24f   : > { %v2418_v52 = vsel %vm5388_vm9, %v2402_v47, %v2288_v0  ;;  %vm5395_vm8 = vmmov %vm5391_vm2 }
 0x250   : > { %v2358_v21 = vpop.permute.xlu0 %2357  ;;  %v2441_v15 = vsel %vm5390_vm0, %v2418_v52, %v2312_v13  ;;  %vm5398_vm12 = vmmov %vm5391_vm2 }
 0x251   : > { %v2472_v25 = vsel %vm5381_vm7, %v2456_v1, %v2358_v21  ;;  %vm5396_vm7 = vnez %v5299_v41  ;;  %vm5400_vm10 = vmmov %vm5391_vm2 }
 0x252   : > { %v2494_v62 = vsel %vm5383_vm14, %v2472_v25, %v2376_v54  ;;  %v2232_v39 = vsel %vm5396_vm7, %v4910_v22, 0  ;;  %vm5399_vm14 = vmmov %vm5391_vm2 }
 0x253   : > { %2754 = vmatprep.mubr.bf16.mxu1 %v2494_v62  ;;  %v2240_v28 = vsel %vm5397_vm1, %v2232_v39, 0  ;;  %vm5402_vm4 = vmmov %vm5391_vm2  ;;  %v2872_v62 = vld [vmem:[%s5034_s14 + $0x20] sm:$0xff]  ;;  %v2874_v39 = vld [vmem:[%s5034_s14 + $0x30] sm:$0xff] }
 0x254   : > { %2755 = vmatmul.mubr.bf16.gmra.mxu1 %v2438_v11  ;;  %v2336_v30 = vpop.permute.xlu0 %2335  ;;  %vm5404_vm9 = vmmov %vm5391_vm2 }
 0x255   : > { %v2458_v56 = vsel %vm5385_vm15, %v4870_v4, %v2336_v30  ;;  %v2239_v4 = vsel %vm5394_vm11, %v4908_v10, 0  ;;  %vm5401_vm15 = vmmov %vm5391_vm2 }
 0x256   : > { %vm5406_vm0 = vmmov %vm5391_vm2 }
 0x257   : > { %vm5408_vm6 = vmmov %vm5406_vm0 }
 0x258   : > { %vm5410_vm11 = vmmov %vm5406_vm0 }
 0x259   : > { %vm5412_vm7 = vmmov %vm5406_vm0 }
 0x25a   : > { %vm5413_vm1 = vmmov %vm5406_vm0 }
 0x25b   : > { %v2360_v34 = vpop.permute.xlu0 %2359 }
 0x25c   : > { %v2474_v57 = vsel %vm5387_vm13, %v2458_v56, %v2360_v34  ;;  %v2873_v56 = vld [vmem:[%s5034_s14 + $0x28] sm:$0xff]  ;;  %vm5403_vm13 = vmmov %vm5391_vm2 }
 0x25f   : > { %v2378_v36 = vpop.permute.xlu0 %2377 }
 0x260   : > { %v2497_v44 = vsel %vm5389_vm3, %v2474_v57, %v2378_v36  ;;  %vm5405_vm3 = vmmov %vm5391_vm2 }
 0x261   : > { %2762 = vmatprep.mubr.bf16.mxu1 %v2497_v44 }
 0x262   : > { %2763 = vmatmul.mubr.bf16.gmra.mxu1 %v2441_v15 }
 0x263   : > { %3341 = vmatprep.mubr.msk.bf16.mxu1 %vm5391_vm2, %v2237_v43  ;;  %vm5407_vm2 = vmmov %vm5406_vm0 }
 0x26a   : > { %3342 = vmatmul.mubr.msk.bf16.vlgmr.msra.gmra.mxu1 %vm5393_vm5, %v2238_v27  ;;  %v3335_v58 = vpop.f32.mrf.mxu0  ;;  %vm5409_vm5 = vmmov %vm5406_vm0 }
 0x26b   : > { %3345 = vmatprep.mubr.msk.bf16.mxu1 %vm5395_vm8, %v2239_v4  ;;  %vm5411_vm8 = vmmov %vm5406_vm0 }
 0x26c   : > { %v2805_v41 = vpop.f32.mrf.mxu0 }
 0x26e   : > { %v3336_v33 = vpop.f32.mrf.mxu0 }
 0x270   : > { %v2808_v51 = vpop.f32.mrf.mxu0 }
 0x272   : > { %3346 = vmatmul.mubr.msk.bf16.gmra.mxu1 %vm5398_vm12, %v2240_v28  ;;  %vm5414_vm12 = vmmov %vm5406_vm0 }
 0x282   : > { %v3339_v42 = vpop.f32.mrf.mxu0 }
 0x284   : > { %v2821_v6 = vpop.f32.mrf.mxu0 }
 0x286   : > { %v3340_v49 = vpop.f32.mrf.mxu0 }
 0x288   : > { %v2824_v13 = vpop.f32.mrf.mxu0 }
 0x2cc   : > { %v3247_v26 = vpop.f32.mrf.mxu1 }
 0x2ce   : > { %v3248_v46 = vpop.f32.mrf.mxu1 }
 0x2cf   : > { %v3249_v29 = vadd.f32 %v3248_v46, %v3247_v26 }
 0x2d0   : > { %v3250_v10 = vpop.f32.mrf.mxu1 }
 0x2d1   : > { %v2709_v22 = vadd.f32 %v3249_v29, %v5029_v20  ;;  %v2875_v29 = vld [vmem:[%s5034_s14 + $0x38] sm:$0xff] }
 0x2d2   : > { %v3251_v61 = vpop.f32.mrf.mxu1 }
 0x2d3   : > { %v2806_v38 = vadd.f32 %v2805_v41, %v2709_v22  ;;  %v3252_v3 = vadd.f32 %v3251_v61, %v3250_v10 }
 0x2d5   : > { %v2884_v50 = vadd.f32 %v2868_v14, %v2806_v38  ;;  %v2712_v59 = vadd.f32 %v3252_v3, %v5029_v20 }
 0x2d7   : > { %v2900_v55 = vmax.f32 %v2884_v50, 0.0  ;;  %v2809_v37 = vadd.f32 %v2808_v51, %v2712_v59 }
 0x2d8   : > { %v3253_v7 = vpop.f32.mrf.mxu1 }
 0x2d9   : > { %2916 = vst.msk [vmem:[%s5043_s12] sm:$0xff] %vm5399_vm14, %v2900_v55  ;;  %v2885_v17 = vadd.f32 %v2869_v45, %v2809_v37 }
 0x2da   : > { %v3254_v23 = vpop.f32.mrf.mxu1 }
 0x2db   : > { %v2901_v48 = vmax.f32 %v2885_v17, 0.0  ;;  %v3255_v18 = vadd.f32 %v3254_v23, %v3253_v7 }
 0x2dc   : > { %v3256_v8 = vpop.f32.mrf.mxu1 }
 0x2dd   : > { %2917 = vst.msk [vmem:[%s5043_s12 + $0x8] sm:$0xff] %vm5400_vm10, %v2901_v48  ;;  %v2717_v31 = vadd.f32 %v3255_v18, %v5029_v20 }
 0x2de   : > { %v3257_v5 = vpop.f32.mrf.mxu1 }
 0x2df   : > { %v2814_v16 = vadd.f32 %v3335_v58, %v2717_v31  ;;  %v3258_v9 = vadd.f32 %v3257_v5, %v3256_v8 }
 0x2e1   : > { %v2886_v24 = vadd.f32 %v2870_v53, %v2814_v16  ;;  %v2720_v40 = vadd.f32 %v3258_v9, %v5029_v20 }
 0x2e3   : > { %v2902_v2 = vmax.f32 %v2886_v24, 0.0  ;;  %v2817_v54 = vadd.f32 %v3336_v33, %v2720_v40  ;;  %v2878_v40 = vld [vmem:[%s5034_s14 + $0x50] sm:$0xff] }
 0x2e4   : > { %v3259_v19 = vpop.f32.mrf.mxu1 }
 0x2e5   : > { %2918 = vst.msk [vmem:[%s5043_s12 + $0x10] sm:$0xff] %vm5401_vm15, %v2902_v2  ;;  %v2887_v35 = vadd.f32 %v2871_v32, %v2817_v54 }
 0x2e6   : > { %v3260_v63 = vpop.f32.mrf.mxu1 }
 0x2e7   : > { %v2903_v1 = vmax.f32 %v2887_v35, 0.0  ;;  %v3261_v21 = vadd.f32 %v3260_v63, %v3259_v19  ;;  %v2876_v35 = vld [vmem:[%s5034_s14 + $0x40] sm:$0xff] }
 0x2e8   : > { %v3262_v12 = vpop.f32.mrf.mxu1 }
 0x2e9   : > { %2919 = vst.msk [vmem:[%s5043_s12 + $0x18] sm:$0xff] %vm5402_vm4, %v2903_v1  ;;  %v2725_v25 = vadd.f32 %v3261_v21, %v5029_v20 }
 0x2ea   : > { %v3263_v11 = vpop.f32.mrf.mxu1 }
 0x2eb   : > { %v2822_v30 = vadd.f32 %v2821_v6, %v2725_v25  ;;  %v3264_v0 = vadd.f32 %v3263_v11, %v3262_v12  ;;  %v2879_v25 = vld [vmem:[%s5034_s14 + $0x58] sm:$0xff] }
 0x2ed   : > { %v2888_v34 = vadd.f32 %v2872_v62, %v2822_v30  ;;  %v2728_v60 = vadd.f32 %v3264_v0, %v5029_v20 }
 0x2ef   : > { %v2904_v47 = vmax.f32 %v2888_v34, 0.0  ;;  %v2825_v57 = vadd.f32 %v2824_v13, %v2728_v60  ;;  %v2877_v34 = vld [vmem:[%s5034_s14 + $0x48] sm:$0xff] }
 0x2f0   : > { %v3265_v36 = vpop.f32.mrf.mxu1 }
 0x2f1   : > { %2920 = vst.msk [vmem:[%s5043_s12 + $0x20] sm:$0xff] %vm5403_vm13, %v2904_v47  ;;  %v2889_v52 = vadd.f32 %v2873_v56, %v2825_v57 }
 0x2f2   : > { %v3266_v44 = vpop.f32.mrf.mxu1 }
 0x2f3   : > { %v2905_v15 = vmax.f32 %v2889_v52, 0.0  ;;  %v3267_v43 = vadd.f32 %v3266_v44, %v3265_v36  ;;  %v2882_v52 = vld [vmem:[%s5034_s14 + $0x70] sm:$0xff] }
 0x2f4   : > { %v3268_v27 = vpop.f32.mrf.mxu1 }
 0x2f5   : > { %2921 = vst.msk [vmem:[%s5043_s12 + $0x28] sm:$0xff] %vm5404_vm9, %v2905_v15  ;;  %v2733_v4 = vadd.f32 %v3267_v43, %v5029_v20 }
 0x2f6   : > { %v3269_v28 = vpop.f32.mrf.mxu1 }
 0x2f7   : > { %v2830_v58 = vadd.f32 %v3339_v42, %v2733_v4  ;;  %v3270_v26 = vadd.f32 %v3269_v28, %v3268_v27  ;;  %v2880_v28 = vld [vmem:[%s5034_s14 + $0x60] sm:$0xff] }
 0x2f9   : > { %v2890_v41 = vadd.f32 %v2874_v39, %v2830_v58  ;;  %v2736_v46 = vadd.f32 %v3270_v26, %v5029_v20 }
 0x2fb   : > { %v2906_v10 = vmax.f32 %v2890_v41, 0.0  ;;  %v2833_v22 = vadd.f32 %v3340_v49, %v2736_v46 }
 0x2fc   : > { %v3271_v33 = vpop.f32.mrf.mxu1 }
 0x2fd   : > { %2922 = vst.msk [vmem:[%s5043_s12 + $0x30] sm:$0xff] %vm5405_vm3, %v2906_v10  ;;  %v2891_v14 = vadd.f32 %v2875_v29, %v2833_v22  ;;  %v2883_v10 = vld [vmem:[%s5034_s14 + $0x78] sm:$0xff] }
 0x2fe   : > { %v3272_v61 = vpop.f32.mrf.mxu1 }
 0x2ff   : > { %v2907_v38 = vmax.f32 %v2891_v14, 0.0  ;;  %v3273_v53 = vadd.f32 %v3272_v61, %v3271_v33 }
 0x300   : > { %v3274_v3 = vpop.f32.mrf.mxu1 }
 0x301   : > { %2923 = vst.msk [vmem:[%s5043_s12 + $0x38] sm:$0xff] %vm5406_vm0, %v2907_v38  ;;  %v2741_v2 = vadd.f32 %v3273_v53, %v5029_v20 }
 0x302   : > { %v3275_v50 = vpop.f32.mrf.mxu1 }
 0x303   : > { %v3276_v42 = vadd.f32 %v3275_v50, %v3274_v3  ;;  %v2881_v3 = vld [vmem:[%s5034_s14 + $0x68] sm:$0xff]  ;;  %s3568_s14 = smov [#allocation2]  }
 0x304   : > { %s3473_s16 = sshll.u32 %s3568_s14, 4  ;;  %s3474_s16 = int_to_ptr.vmem [resolvable:$false] %s3473_s16 }
 0x305   : > { %v2744_v30 = vadd.f32 %v3276_v42, %v5029_v20  ;;  %s3475_s17 = scalar_lea.vmem %s3474_s16, 4096  ;;  %p3476_p7 = scmp.lt.s32.totalorder %s5111_s9, %s3474_s16 }
 0x306   : > { %p3477_p9 = scmp.lt.s32.totalorder %s3475_s17, %s3469_s24 }
 0x308   : > { %v3277_v59 = vpop.f32.mrf.mxu1  ;;  %p3478_p10 = por %p3477_p9, %p3476_p7 }
 0x30a   : > { %v3278_v51 = vpop.f32.mrf.mxu1  ;;  %p3479_p11 = pnand %p3478_p10, %p3472_p6 }
 0x30b   : > { %v3279_v8 = vadd.f32 %v3278_v51, %v3277_v59 }
 0x30c   : > { %v3280_v45 = vpop.f32.mrf.mxu1 }
 0x30d   : > { %v2749_v9 = vadd.f32 %v3279_v8, %v5029_v20 }
 0x30e   : > { %v3281_v55 = vpop.f32.mrf.mxu1 }
 0x30f   : > { %v3282_v16 = vadd.f32 %v3281_v55, %v3280_v45 }
 0x311   : > { %v2752_v1 = vadd.f32 %v3282_v16, %v5029_v20 }
 0x314   : > { %v3283_v37 = vpop.f32.mrf.mxu1 }
 0x316   : > { %v3284_v7 = vpop.f32.mrf.mxu1 }
 0x317   : > { %v3285_v21 = vadd.f32 %v3284_v7, %v3283_v37 }
 0x318   : > { %v3286_v17 = vpop.f32.mrf.mxu1 }
 0x319   : > { %v2757_v44 = vadd.f32 %v3285_v21, %v5029_v20 }
 0x31a   : > { %v3287_v23 = vpop.f32.mrf.mxu1 }
 0x31b   : > { %v3288_v15 = vadd.f32 %v3287_v23, %v3286_v17 }
 0x31d   : > { %v2760_v61 = vadd.f32 %v3288_v15, %v5029_v20 }
 0x322   : > { %v3289_v48 = vpop.f32.mrf.mxu1 }
 0x324   : > { %v3290_v18 = vpop.f32.mrf.mxu1 }
 0x325   : > { %v3291_v54 = vadd.f32 %v3290_v18, %v3289_v48 }
 0x326   : > { %v3292_v31 = vpop.f32.mrf.mxu1 }
 0x327   : > { %v2765_v60 = vadd.f32 %v3291_v54, %v5029_v20 }
 0x328   : > { %v3293_v5 = vpop.f32.mrf.mxu1 }
 0x329   : > { %v3294_v13 = vadd.f32 %v3293_v5, %v3292_v31 }
 0x32a   : > { %v3343_v24 = vpop.f32.mrf.mxu1 }
 0x32b   : > { %v2846_v32 = vadd.f32 %v3343_v24, %v2749_v9  ;;  %v2768_v46 = vadd.f32 %v3294_v13, %v5029_v20 }
 0x32c   : > { %v2837_v19 = vpop.f32.mrf.mxu1 }
 0x32d   : > { %v2894_v6 = vadd.f32 %v2878_v40, %v2846_v32  ;;  %v2838_v63 = vadd.f32 %v2837_v19, %v2741_v2 }
 0x32e   : > { %v3344_v12 = vpop.f32.mrf.mxu1 }
 0x32f   : > { %v2910_v49 = vmax.f32 %v2894_v6, 0.0  ;;  %v2892_v62 = vadd.f32 %v2876_v35, %v2838_v63  ;;  %v2849_v11 = vadd.f32 %v3344_v12, %v2752_v1 }
 0x330   : > { %v2840_v0 = vpop.f32.mrf.mxu1 }
 0x331   : > { %2926 = vst.msk [vmem:[%s5043_s12 + $0x50] sm:$0xff] %vm5407_vm2, %v2910_v49  ;;  %v2908_v56 = vmax.f32 %v2892_v62, 0.0  ;;  %v2895_v47 = vadd.f32 %v2879_v25, %v2849_v11  ;;  %v2841_v57 = vadd.f32 %v2840_v0, %v2744_v30 }
 0x332   : > { %v3347_v36 = vpop.f32.mrf.mxu1 }
 0x333   : > { %2924 = vst.msk [vmem:[%s5043_s12 + $0x40] sm:$0xff] %vm5408_vm6, %v2908_v56  ;;  %v2911_v43 = vmax.f32 %v2895_v47, 0.0  ;;  %v2893_v27 = vadd.f32 %v2877_v34, %v2841_v57  ;;  %v2862_v4 = vadd.f32 %v3347_v36, %v2765_v60 }
 0x334   : > { %v2853_v39 = vpop.f32.mrf.mxu1 }
 0x335   : > { %2927 = vst.msk [vmem:[%s5043_s12 + $0x58] sm:$0xff] %vm5409_vm5, %v2911_v43  ;;  %v2909_v58 = vmax.f32 %v2893_v27, 0.0  ;;  %v2898_v26 = vadd.f32 %v2882_v52, %v2862_v4  ;;  %v2854_v41 = vadd.f32 %v2853_v39, %v2757_v44 }
 0x336   : > { %v3348_v29 = vpop.f32.mrf.mxu1 }
 0x337   : > { %2925 = vst.msk [vmem:[%s5043_s12 + $0x48] sm:$0xff] %vm5410_vm11, %v2909_v58  ;;  %v2914_v22 = vmax.f32 %v2898_v26, 0.0  ;;  %v2896_v33 = vadd.f32 %v2880_v28, %v2854_v41  ;;  %v2865_v14 = vadd.f32 %v3348_v29, %v2768_v46 }
 0x338   : > { %v2856_v38 = vpop.f32.mrf.mxu1 }
 0x339   : > { %2930 = vst.msk [vmem:[%s5043_s12 + $0x70] sm:$0xff] %vm5411_vm8, %v2914_v22  ;;  %v2912_v50 = vmax.f32 %v2896_v33, 0.0  ;;  %v2899_v59 = vadd.f32 %v2883_v10, %v2865_v14  ;;  %v2857_v51 = vadd.f32 %v2856_v38, %v2760_v61 }
 0x33b   : > { %2928 = vst.msk [vmem:[%s5043_s12 + $0x60] sm:$0xff] %vm5412_vm7, %v2912_v50  ;;  %v2915_v20 = vmax.f32 %v2899_v59, 0.0  ;;  %v2897_v45 = vadd.f32 %v2881_v3, %v2857_v51 }
 0x33d   : > { %2931 = vst.msk [vmem:[%s5043_s12 + $0x78] sm:$0xff] %vm5413_vm1, %v2915_v20  ;;  %v2913_v55 = vmax.f32 %v2897_v45, 0.0 }
 0x33f   : > { %2929 = vst.msk [vmem:[%s5043_s12 + $0x68] sm:$0xff] %vm5414_vm12, %v2913_v55 }
 0x340   : > { %3482 = shalt.err (!%p3479_p11)
}
 0x341   : > { %s3483_s18 = scalar_lea.hbm %s5105_s13, 2048  ;;  %s3487_s25 = scalar_lea.hbm %s5174_s6, 8192 }
 0x342   : > { %p3484_p12 = scmp.ne.s32.totalorder %s5105_s13, %s3483_s18  ;;  %p3488_p1 = scmp.lt.s32.totalorder %s5105_s13, %s5174_s6 }
 0x343   : > { %p3489_p2 = scmp.lt.s32.totalorder %s3487_s25, %s3483_s18 }
 0x344   : > { %p3485_p13 = pnand %p3484_p12, %p3657_p3 }
 0x345   : > { %p3490_p4 = por %p3489_p2, %p3488_p1 }
 0x346   : > { %p3486_p0 = pneg %p3485_p13 }
 0x348   : > { %p3491_p5 = pnand %p3490_p4, %p3486_p0 }
 0x34a   : > { %3494 = shalt.err (!%p3491_p5)
}
 0x34b   : > { %s3569_s24 = smov 128   ;;  %s3570_s14 = smov 8  }
 0x34c   : > { %3355 = dma.vmem_to_hbm [thread:$0]  (%p3657_p3), %s5111_s9, 2048, %s5105_s13, %s5117_s29, %s3569_s24, %s3569_s24, %s3570_s14  }
 0x34d PF: > { %p3361_p6 = scmp.ge.s32.totalorder %s3561_s28, 2  ;;  %s2963_s16 = sand.u32 1, %s3533_s21  }
 0x34e   : > { %s2964_s17 = scalar_lea.sflag [#allocation3], %s2963_s16 }
 0x34f   : > { %p3358_p7 = pnand %p3361_p6, %p3666_p8 }
 0x351   : > { %p3359_p9 = pneg %p3358_p7 }
 0x353   : > { %3528 = dma.done.wait (%p3359_p9), %s2964_s17, 2048  }
 0x354   : > { %3530 = vsyncadd (%p3359_p9), %s2964_s17, 4294965248  ;;  %s19_s28 = sadd.s32 1, %s3561_s28   ;;  %s5415_s21 = smov %s3537_s22 }
 0x355   : > { %p16_p10 = scmp.ge.s32.totalorder %s19_s28, 6   ;;  %s5416_s22 = smov %s3541_s23 }
 0x356   : > { %s5417_s23 = smov %s3675_s15  ;;  %s5418_s24 = smov %s3553_s26 }
 0x357   : > { %s5419_s25 = smov %s3557_s27  ;;  %s5420_s26 = smov %s5423_s7 }
 0x358   : > { %s5421_s27 = smov %s5427_s8  ;;  %18 = sbr.rel (!%p16_p10) target bundleno = 5 (0x5), region = 82 }
 0x35d   :  { %2969 = vsyncpa [#allocation3], 1 }
 0x35e   :  { %2971 = vsyncpa [#allocation3 + $0x1], 1 }

</bundles_post_ra>
